<compile_context>
chip_gen: v7x
topology: tpu7x:2x2x1
jax: 0.10.0
libtpu: 0.0.40
codegen_flags: <defaults>
</compile_context>

<pallas_src>
import jax
import jax.numpy as jnp
from jax.experimental import pallas as pl
from jax.experimental.pallas import tpu as pltpu

N_COUPLING_BLOCKS = 2     # hparams.model.coupling_blocks (small, synthetic)
CLAMP_ALPHA = 1.9         # hparams.model.clamp_alpha

# Set to jnp.bfloat16 at real FastFlow widths (c >= 256, hidden >= 512) on
# v6e/v7x: MXU is bf16-native and weight VMEM halves; accumulation stays f32.
MXU_DTYPE = jnp.float32


# ----------------------------------------------------------------------------
# Fused kernel: 1x1-conv encoder projection (+ReLU) + affine-coupling flow for
# ALL scales (per-tile scale id selects the weight block via scalar prefetch).
# ----------------------------------------------------------------------------
def _fused_flow_kernel(sid_ref, x_ref, we_ref, be_ref, w1_ref, b1_ref,
                       wst_ref, bst_ref, stats_ref):
    # sid_ref:  (num_tiles,) SMEM   tile -> scale id (only used by index_maps)
    # x_ref:    (cin, tn)           pooled pixels, pixels on lanes
    # we_ref:   (1, c_max, cin)     encoder 1x1 conv weight (channel-padded)
    # be_ref:   (1, c_max, 1)
    # w1_ref:   (1, NB, hid, half)  coupling subnet layer-1
    # b1_ref:   (1, NB, hid, 1)
    # wst_ref:  (1, NB, 2*half, hid)  fused [ws; wt] projection
    # bst_ref:  (1, NB, 2*half, 1)
    # stats_ref:(2, tn)  row0 = 0.5*sum_c(u^2) - logdet, row1 = sum_c(u)
    del sid_ref
    x = x_ref[...]
    we = we_ref[0]
    be = be_ref[0]
    w1_all = w1_ref[0]
    b1_all = b1_ref[0]
    wst_all = wst_ref[0]
    bst_all = bst_ref[0]

    cin = x.shape[0]
    tn = x.shape[1]
    c_max = we.shape[0]
    half = c_max // 2

    # Encoder projection: cin == 3, so a K=3 MXU matmul would be ~3% systolic
    # utilization -> lane-dense VPU broadcast FMAs instead (rides spare VALU).
    feat = we[:, 0:1] * x[0:1, :]
    for k in range(1, cin):
        feat = feat + we[:, k:k + 1] * x[k:k + 1, :]
    feat = jnp.maximum(feat + be, 0.0)                       # (c_max, tn)

    a = feat[:half, :]
    b = feat[half:, :]
    logdet = jnp.zeros((1, tn), jnp.float32)

    # TODO(synk): fastflow_head (FrEIA coupling stack) source not provided;
    # synthetic affine coupling with alpha*tanh soft clamp stands in for
    # FrEIA's exp(clamp * 0.636 * atan(.)) form.
    for blk in range(N_COUPLING_BLOCKS):
        drv, oth = (a, b) if blk % 2 == 0 else (b, a)
        h = jnp.maximum(
            jnp.dot(w1_all[blk].astype(MXU_DTYPE), drv.astype(MXU_DTYPE),
                    preferred_element_type=jnp.float32) + b1_all[blk], 0.0)
        # Single fused matmul for both s and t (stacked rows).
        st = (jnp.dot(wst_all[blk].astype(MXU_DTYPE), h.astype(MXU_DTYPE),
                      preferred_element_type=jnp.float32) + bst_all[blk])
        s_raw = st[:half, :]
        t = st[half:, :]
        # TODO(synk): tanh+exp are 2 EUP passes/block; the single-EUP slot is
        # the likely binding unit once memory traffic is trimmed (see review).
        s = CLAMP_ALPHA * jnp.tanh(s_raw * (1.0 / CLAMP_ALPHA))
        new = oth * jnp.exp(s) + t
        logdet = logdet + jnp.sum(s, axis=0, keepdims=True)
        if blk % 2 == 0:
            b = new
        else:
            a = new

    sumsq = (jnp.sum(a * a, axis=0, keepdims=True)
             + jnp.sum(b * b, axis=0, keepdims=True))
    csum = (jnp.sum(a, axis=0, keepdims=True)
            + jnp.sum(b, axis=0, keepdims=True))
    # One lane-dense store for the whole stats slab (no per-row masked stores).
    stats_ref[...] = jnp.concatenate([0.5 * sumsq - logdet, csum], axis=0)


# ----------------------------------------------------------------------------
# Chip/VMEM-aware tile selection.
# ----------------------------------------------------------------------------
def _choose_tile(n_list, cin, c_max, hid_max):
    try:
        vmem_cap = int(pltpu.get_tpu_info().vmem_capacity_bytes)
    except Exception:   # emulator / API drift: assume the smallest (v7x) VMEM
        vmem_cap = 64 * 1024 * 1024
    budget = vmem_cap // 4            # headroom for double-buffering + scratch
    # f32 bytes live per lane column: double-buffered IO + kernel temporaries.
    per_lane = 4 * (2 * (cin + 2) + 6 * c_max + 2 * hid_max)
    tn_cap = max(128, (budget // per_lane) // 128 * 128)
    total = sum(n_list)
    # Aim for >= ~8 grid steps at large sizes (pipelining + v7x megacore),
    # never below one 128-lane tile, never wider than the widest scale.
    tn_target = max(128, ((total // 8 + 127) // 128) * 128)
    tn_max_useful = ((max(n_list) + 127) // 128) * 128
    tn = min(tn_cap, tn_target, tn_max_useful, 2048)
    vmem_limit = int(min(vmem_cap // 2, 128 * 1024 * 1024))
    return tn, vmem_limit


# ----------------------------------------------------------------------------
# Weight packing: channel-pad every scale to (c_max, hid_max) and stack along
# a leading "scale" axis; fuse ws/wt into one [s; t] projection.
# ----------------------------------------------------------------------------
def _pack_scale_params(enc_params, flow_params):
    n_scales = len(enc_params)
    c_list = [w.shape[0] for (w, _b) in enc_params]
    hid_list = [fp["w1"].shape[1] for fp in flow_params]
    cin = enc_params[0][0].shape[1]
    c_max = max(c_list)
    half_max = c_max // 2
    hid_max = max(hid_list)
    assert half_max % 8 == 0

    we = jnp.zeros((n_scales, c_max, cin), jnp.float32)
    be = jnp.zeros((n_scales, c_max, 1), jnp.float32)
    w1 = jnp.zeros((n_scales, N_COUPLING_BLOCKS, hid_max, half_max), jnp.float32)
    b1 = jnp.zeros((n_scales, N_COUPLING_BLOCKS, hid_max, 1), jnp.float32)
    wst = jnp.zeros((n_scales, N_COUPLING_BLOCKS, 2 * half_max, hid_max), jnp.float32)
    bst = jnp.zeros((n_scales, N_COUPLING_BLOCKS, 2 * half_max, 1), jnp.float32)

    for s, ((w_e, b_e), fp) in enumerate(zip(enc_params, flow_params)):
        c = c_list[s]
        half = c // 2
        hd = hid_list[s]
        # Encoder rows arranged so the a-half lands in [0:half] and the b-half
        # in [half_max:half_max+half]; the zero padding then propagates exactly
        # (padded channels stay 0 through every coupling block).
        we = we.at[s, :half].set(w_e[:half])
        we = we.at[s, half_max:half_max + half].set(w_e[half:])
        be = be.at[s, :half].set(b_e[:half])
        be = be.at[s, half_max:half_max + half].set(b_e[half:])
        w1 = w1.at[s, :, :hd, :half].set(fp["w1"])
        b1 = b1.at[s, :, :hd].set(fp["b1"])
        wst = wst.at[s, :, :half, :hd].set(fp["ws"])
        wst = wst.at[s, :, half_max:half_max + half, :hd].set(fp["wt"])
        bst = bst.at[s, :, :half].set(fp["bs"])
        bst = bst.at[s, :, half_max:half_max + half].set(fp["bt"])

    return dict(we=we, be=be, w1=w1, b1=b1, wst=wst, bst=bst,
                c_max=c_max, half_max=half_max, hid_max=hid_max)


# ----------------------------------------------------------------------------
# Glue: synthetic encoder pooling, fused multi-scale stats, anomaly map.
# ----------------------------------------------------------------------------
def _avg_pool_nchw(images_nchw, stride):
    # TODO(synk): reference uses a pretrained CNN backbone (self.encoder);
    # approximated by average pooling + a learned 1x1 conv (the conv is fused
    # into the Pallas kernel).
    b, c, h, w = images_nchw.shape
    return images_nchw.reshape(b, c, h // stride, stride,
                               w // stride, stride).mean(axis=(3, 5))


def _fastflow_stats(images, enc_params, flow_params, strides):
    """One fused pallas_call over all scales; returns (log_probs, dists)."""
    bsz, cin = images.shape[0], images.shape[1]
    packed = _pack_scale_params(enc_params, flow_params)

    xs, n_list, hw_list = [], [], []
    for stride in strides:
        pooled = _avg_pool_nchw(images, stride)               # (B, cin, hp, wp)
        hp, wp = pooled.shape[2], pooled.shape[3]
        # Whole-plane block permute, then flatten to pixels-on-lanes.
        x = jnp.transpose(pooled, (1, 0, 2, 3)).reshape(cin, -1)
        xs.append(x)
        n_list.append(x.shape[1])
        hw_list.append((hp, wp))

    tn, vmem_limit = _choose_tile(n_list, cin, packed["c_max"], packed["hid_max"])
    pads = [(-n) % tn for n in n_list]
    x_cat = jnp.concatenate(
        [jnp.pad(x, ((0, 0), (0, p))) for x, p in zip(xs, pads)], axis=1)
    tiles_per = [(n + p) // tn for n, p in zip(n_list, pads)]
    sid_list = []
    for s_idx, t in enumerate(tiles_per):
        sid_list.extend([s_idx] * t)
    sid = jnp.asarray(sid_list, dtype=jnp.int32)
    num_tiles = len(sid_list)

    def wspec(name):
        shp = packed[name].shape
        nd = len(shp)
        return pl.BlockSpec(
            (1,) + shp[1:],
            lambda i, sid_ref, _nd=nd: (sid_ref[i],) + (0,) * (_nd - 1))

    stats = pl.pallas_call(
        _fused_flow_kernel,
        out_shape=jax.ShapeDtypeStruct((2, x_cat.shape[1]), jnp.float32),
        grid_spec=pltpu.PrefetchScalarGridSpec(
            num_scalar_prefetch=1,
            grid=(num_tiles,),
            in_specs=[
                pl.BlockSpec((cin, tn), lambda i, sid_ref: (0, i)),
                wspec("we"), wspec("be"), wspec("w1"), wspec("b1"),
                wspec("wst"), wspec("bst"),
            ],
            out_specs=pl.BlockSpec((2, tn), lambda i, sid_ref: (0, i)),
        ),
        compiler_params=pltpu.CompilerParams(
            dimension_semantics=("parallel",),
            vmem_limit_bytes=vmem_limit),
    )(sid, x_cat, packed["we"], packed["be"], packed["w1"], packed["b1"],
      packed["wst"], packed["bst"])

    log_probs, distributions = [], []
    off = 0
    for (enc_w, _b), (hp, wp), n_s, t_s in zip(enc_params, hw_list,
                                               n_list, tiles_per):
        c = enc_w.shape[0]
        row0 = stats[0, off:off + n_s]     # 0.5*sum_c(u^2) - logdet, per pixel
        row1 = stats[1, off:off + n_s]     # sum_c(u), per pixel
        # get_logp: mean_b(0.5*sum u^2 - logdet_b)/C == sum over pixels /(B*C)
        log_probs.append(jnp.sum(row0) / (bsz * c))
        distributions.append((row1 / c).reshape(bsz, hp, wp))   # torch.mean(p_u,1)
        off += t_s * tn
    return log_probs, distributions


def anomaly_map_generator(distributions, image_size):
    # TODO(synk): exact AnomalyMapGenerator source not provided; CFLOW-style
    # per-image normalize -> exp -> bilinear upsample -> sum -> invert
    # (torch align_corners semantics not reproduced).
    score = None
    for d in distributions:
        d_max = jnp.max(d, axis=(1, 2), keepdims=True)
        prob = jnp.exp(d - d_max)
        up = jax.image.resize(prob, (d.shape[0], image_size[0], image_size[1]),
                              method="bilinear")
        score = up if score is None else score + up
    smax = jnp.max(score, axis=(1, 2), keepdims=True)
    return smax - score


def fastflow_forward(images, enc_params, flow_params, strides):
    log_probs, distributions = _fastflow_stats(images, enc_params,
                                               flow_params, strides)
    out = anomaly_map_generator(distributions,
                                (images.shape[2], images.shape[3]))
    return out, log_probs


# ----------------------------------------------------------------------------
# Pure-JAX reference of one scale (same math) for checking.
# ----------------------------------------------------------------------------
def _reference_scale(images, enc_w, enc_b, fp, stride):
    hi = jax.lax.Precision.HIGHEST
    pooled = _avg_pool_nchw(images, stride)
    bsz, cin, hp, wp = pooled.shape
    c = enc_w.shape[0]
    half = c // 2
    x = jnp.transpose(pooled, (0, 2, 3, 1)).reshape(-1, cin)
    feat = jnp.maximum(jnp.dot(x, enc_w.T, precision=hi)
                       + enc_b[:, 0][None, :], 0.0)
    a, b = feat[:, :half], feat[:, half:]
    logdet = jnp.zeros((x.shape[0],), jnp.float32)
    for blk in range(N_COUPLING_BLOCKS):
        drv, oth = (a, b) if blk % 2 == 0 else (b, a)
        h = jnp.maximum(jnp.dot(drv, fp["w1"][blk].T, precision=hi)
                        + fp["b1"][blk][:, 0][None, :], 0.0)
        s_raw = jnp.dot(h, fp["ws"][blk].T, precision=hi) + fp["bs"][blk][:, 0][None, :]
        s = CLAMP_ALPHA * jnp.tanh(s_raw / CLAMP_ALPHA)
        t = jnp.dot(h, fp["wt"][blk].T, precision=hi) + fp["bt"][blk][:, 0][None, :]
        new = oth * jnp.exp(s) + t
        logdet = logdet + jnp.sum(s, axis=1)
        if blk % 2 == 0:
            b = new
        else:
            a = new
    u = jnp.concatenate([a, b], axis=1)
    per_img = (0.5 * jnp.sum(u * u, axis=1) - logdet).reshape(bsz, hp * wp).sum(axis=1)
    logp = jnp.mean(per_img) / c
    dist = jnp.mean(u, axis=1).reshape(bsz, hp, wp)
    return logp, dist


# ----------------------------------------------------------------------------
if __name__ == "__main__":
    key = jax.random.PRNGKey(0)
    keys = iter(jax.random.split(key, 64))

    B, CIMG, HIMG, WIMG = 2, 3, 32, 32
    pool_dims = [16, 32, 64]     # channel dims of the pooled encoder layers
    strides = [2, 4, 8]          # -> spatial dims 16, 8, 4
    hidden = [16, 32, 64]        # coupling subnet hidden width per layer

    images = jax.random.normal(next(keys), (B, CIMG, HIMG, WIMG), jnp.float32)

    enc_params = []
    for c in pool_dims:
        wmat = 0.3 * jax.random.normal(next(keys), (c, CIMG), jnp.float32)   # (cout, cin)
        bias = 0.1 * jax.random.normal(next(keys), (c, 1), jnp.float32)
        enc_params.append((wmat, bias))

    flow_params = []
    for c, hd in zip(pool_dims, hidden):
        half = c // 2
        p = dict(
            w1=0.2 * jax.random.normal(next(keys), (N_COUPLING_BLOCKS, hd, half)),
            b1=0.05 * jax.random.normal(next(keys), (N_COUPLING_BLOCKS, hd, 1)),
            ws=0.1 * jax.random.normal(next(keys), (N_COUPLING_BLOCKS, half, hd)),
            bs=0.05 * jax.random.normal(next(keys), (N_COUPLING_BLOCKS, half, 1)),
            wt=0.1 * jax.random.normal(next(keys), (N_COUPLING_BLOCKS, half, hd)),
            bt=0.05 * jax.random.normal(next(keys), (N_COUPLING_BLOCKS, half, 1)),
        )
        flow_params.append({k: v.astype(jnp.float32) for k, v in p.items()})

    # Full forward (single fused pallas_call for all scales).
    anomaly_map, log_probs = fastflow_forward(images, enc_params, flow_params, strides)
    anomaly_map = jax.block_until_ready(anomaly_map)
    _ = [jax.block_until_ready(lp) for lp in log_probs]

    assert anomaly_map.shape == (B, HIMG, WIMG)
    assert anomaly_map.dtype == jnp.float32
    assert not bool(jnp.any(jnp.isnan(anomaly_map)))

    # Check the fused kernel path (per-scale logp + distribution, and the
    # anomaly map) against a pure-JAX reference (loose tolerance: MXU vs XLA
    # matmul precision paths).
    k_logps, k_dists = _fastflow_stats(images, enc_params, flow_params, strides)
    ref_logps, ref_dists = [], []
    for (we, be), fp, s in zip(enc_params, flow_params, strides):
        lp_r, d_r = _reference_scale(images, we, be, fp, s)
        ref_logps.append(lp_r)
        ref_dists.append(d_r)
    for lp_k, lp_r, d_k, d_r in zip(k_logps, ref_logps, k_dists, ref_dists):
        assert bool(jnp.allclose(lp_k, lp_r, rtol=1e-2, atol=1e-2))
        assert bool(jnp.allclose(d_k, d_r, rtol=1e-2, atol=1e-2))
    ref_map = anomaly_map_generator(ref_dists, (HIMG, WIMG))
    assert bool(jnp.allclose(anomaly_map, ref_map, rtol=1e-2, atol=1e-2))

    print("KERNEL_OK")
</pallas_src>

<mosaic_0001>
module attributes {stable_mosaic.version = 11 : i64} {
  func.func @_fused_flow_kernel(%arg0: i32, %arg1: memref<6xi32, #tpu.memory_space<smem>>, %arg2: memref<3x128xf32, #tpu.memory_space<vmem>>, %arg3: memref<1x64x3xf32, #tpu.memory_space<vmem>>, %arg4: memref<1x64x1xf32, #tpu.memory_space<vmem>>, %arg5: memref<1x2x64x32xf32, #tpu.memory_space<vmem>>, %arg6: memref<1x2x64x1xf32, #tpu.memory_space<vmem>>, %arg7: memref<1x2x64x64xf32, #tpu.memory_space<vmem>>, %arg8: memref<1x2x64x1xf32, #tpu.memory_space<vmem>>, %arg9: memref<2x128xf32, #tpu.memory_space<vmem>>) attributes {dimension_semantics = [#tpu.dimension_semantics<parallel>], iteration_bounds = array<i64: 6>, scalar_prefetch = 1 : i64, scratch_operands = 0 : i64, tpu.core_type = #tpu.core_type<tc>, window_params = [{transform_indices = @transform_0, window_bounds = array<i64: 3, 128>}, {transform_indices = @transform_1, window_bounds = array<i64: 1, 64, 3>}, {transform_indices = @transform_2, window_bounds = array<i64: 1, 64, 1>}, {transform_indices = @transform_3, window_bounds = array<i64: 1, 2, 64, 32>}, {transform_indices = @transform_4, window_bounds = array<i64: 1, 2, 64, 1>}, {transform_indices = @transform_5, window_bounds = array<i64: 1, 2, 64, 64>}, {transform_indices = @transform_6, window_bounds = array<i64: 1, 2, 64, 1>}, {transform_indices = @transform_7, window_bounds = array<i64: 2, 128>}]} {
    %c0 = arith.constant 0 : index
    %c0_0 = arith.constant 0 : index
    %0 = vector.load %arg2[%c0, %c0_0] : memref<3x128xf32, #tpu.memory_space<vmem>>, vector<3x128xf32>
    %c0_1 = arith.constant 0 : index
    %c0_2 = arith.constant 0 : index
    %c0_3 = arith.constant 0 : index
    %1 = vector.load %arg3[%c0_1, %c0_2, %c0_3] : memref<1x64x3xf32, #tpu.memory_space<vmem>>, vector<1x64x3xf32>
    %2 = vector.shape_cast %1 : vector<1x64x3xf32> to vector<64x3xf32>
    %c0_4 = arith.constant 0 : index
    %c0_5 = arith.constant 0 : index
    %c0_6 = arith.constant 0 : index
    %3 = vector.load %arg4[%c0_4, %c0_5, %c0_6] : memref<1x64x1xf32, #tpu.memory_space<vmem>>, vector<1x64x1xf32>
    %4 = vector.shape_cast %3 : vector<1x64x1xf32> to vector<64x1xf32>
    %c0_7 = arith.constant 0 : index
    %c0_8 = arith.constant 0 : index
    %c0_9 = arith.constant 0 : index
    %c0_10 = arith.constant 0 : index
    %5 = vector.load %arg5[%c0_7, %c0_8, %c0_9, %c0_10] : memref<1x2x64x32xf32, #tpu.memory_space<vmem>>, vector<1x2x64x32xf32>
    %6 = vector.shape_cast %5 : vector<1x2x64x32xf32> to vector<2x64x32xf32>
    %c0_11 = arith.constant 0 : index
    %c0_12 = arith.constant 0 : index
    %c0_13 = arith.constant 0 : index
    %c0_14 = arith.constant 0 : index
    %7 = vector.load %arg6[%c0_11, %c0_12, %c0_13, %c0_14] : memref<1x2x64x1xf32, #tpu.memory_space<vmem>>, vector<1x2x64x1xf32>
    %8 = vector.shape_cast %7 : vector<1x2x64x1xf32> to vector<2x64x1xf32>
    %c0_15 = arith.constant 0 : index
    %c0_16 = arith.constant 0 : index
    %c0_17 = arith.constant 0 : index
    %c0_18 = arith.constant 0 : index
    %9 = vector.load %arg7[%c0_15, %c0_16, %c0_17, %c0_18] : memref<1x2x64x64xf32, #tpu.memory_space<vmem>>, vector<1x2x64x64xf32>
    %10 = vector.shape_cast %9 : vector<1x2x64x64xf32> to vector<2x64x64xf32>
    %c0_19 = arith.constant 0 : index
    %c0_20 = arith.constant 0 : index
    %c0_21 = arith.constant 0 : index
    %c0_22 = arith.constant 0 : index
    %11 = vector.load %arg8[%c0_19, %c0_20, %c0_21, %c0_22] : memref<1x2x64x1xf32, #tpu.memory_space<vmem>>, vector<1x2x64x1xf32>
    %12 = vector.shape_cast %11 : vector<1x2x64x1xf32> to vector<2x64x1xf32>
    %13 = vector.extract_strided_slice %2 {offsets = [0, 0], sizes = [64, 1], strides = [1, 1]} : vector<64x3xf32> to vector<64x1xf32>
    %14 = vector.extract_strided_slice %0 {offsets = [0, 0], sizes = [1, 128], strides = [1, 1]} : vector<3x128xf32> to vector<1x128xf32>
    %15 = vector.broadcast %13 : vector<64x1xf32> to vector<64x128xf32>
    %16 = vector.broadcast %14 : vector<1x128xf32> to vector<64x128xf32>
    %17 = arith.mulf %15, %16 : vector<64x128xf32>
    %18 = vector.extract_strided_slice %2 {offsets = [0, 1], sizes = [64, 1], strides = [1, 1]} : vector<64x3xf32> to vector<64x1xf32>
    %19 = vector.extract_strided_slice %0 {offsets = [1, 0], sizes = [1, 128], strides = [1, 1]} : vector<3x128xf32> to vector<1x128xf32>
    %20 = vector.broadcast %18 : vector<64x1xf32> to vector<64x128xf32>
    %21 = vector.broadcast %19 : vector<1x128xf32> to vector<64x128xf32>
    %22 = arith.mulf %20, %21 : vector<64x128xf32>
    %23 = arith.addf %17, %22 : vector<64x128xf32>
    %24 = vector.extract_strided_slice %2 {offsets = [0, 2], sizes = [64, 1], strides = [1, 1]} : vector<64x3xf32> to vector<64x1xf32>
    %25 = vector.extract_strided_slice %0 {offsets = [2, 0], sizes = [1, 128], strides = [1, 1]} : vector<3x128xf32> to vector<1x128xf32>
    %26 = vector.broadcast %24 : vector<64x1xf32> to vector<64x128xf32>
    %27 = vector.broadcast %25 : vector<1x128xf32> to vector<64x128xf32>
    %28 = arith.mulf %26, %27 : vector<64x128xf32>
    %29 = arith.addf %23, %28 : vector<64x128xf32>
    %30 = vector.broadcast %4 : vector<64x1xf32> to vector<64x128xf32>
    %31 = arith.addf %29, %30 : vector<64x128xf32>
    %cst = arith.constant 0.000000e+00 : f32
    %32 = vector.broadcast %cst : f32 to vector<64x128xf32>
    %33 = arith.maximumf %31, %32 : vector<64x128xf32>
    %34 = vector.extract_strided_slice %33 {offsets = [0, 0], sizes = [32, 128], strides = [1, 1]} : vector<64x128xf32> to vector<32x128xf32>
    %35 = vector.extract_strided_slice %33 {offsets = [32, 0], sizes = [32, 128], strides = [1, 1]} : vector<64x128xf32> to vector<32x128xf32>
    %cst_23 = arith.constant 0.000000e+00 : f32
    %36 = vector.broadcast %cst_23 : f32 to vector<1x128xf32>
    %37 = vector.extract_strided_slice %6 {offsets = [0, 0, 0], sizes = [1, 64, 32], strides = [1, 1, 1]} : vector<2x64x32xf32> to vector<1x64x32xf32>
    %38 = vector.shape_cast %37 : vector<1x64x32xf32> to vector<64x32xf32>
    %cst_24 = arith.constant dense<0.000000e+00> : vector<64x128xf32>
    %39 = tpu.matmul %38, %34, %cst_24 {dimension_numbers = #tpu.dot_dimension_numbers<[1], [0], [0], [1], [0, 0, 1, 1], [], []>} : vector<64x32xf32>, vector<32x128xf32>, vector<64x128xf32> -> vector<64x128xf32>
    %40 = vector.extract_strided_slice %8 {offsets = [0, 0, 0], sizes = [1, 64, 1], strides = [1, 1, 1]} : vector<2x64x1xf32> to vector<1x64x1xf32>
    %41 = vector.shape_cast %40 : vector<1x64x1xf32> to vector<64x1xf32>
    %42 = vector.broadcast %41 : vector<64x1xf32> to vector<64x128xf32>
    %43 = arith.addf %39, %42 : vector<64x128xf32>
    %cst_25 = arith.constant 0.000000e+00 : f32
    %44 = vector.broadcast %cst_25 : f32 to vector<64x128xf32>
    %45 = arith.maximumf %43, %44 : vector<64x128xf32>
    %46 = vector.extract_strided_slice %10 {offsets = [0, 0, 0], sizes = [1, 64, 64], strides = [1, 1, 1]} : vector<2x64x64xf32> to vector<1x64x64xf32>
    %47 = vector.shape_cast %46 : vector<1x64x64xf32> to vector<64x64xf32>
    %cst_26 = arith.constant dense<0.000000e+00> : vector<64x128xf32>
    %48 = tpu.matmul %47, %45, %cst_26 {dimension_numbers = #tpu.dot_dimension_numbers<[1], [0], [0], [1], [0, 0, 1, 1], [], []>} : vector<64x64xf32>, vector<64x128xf32>, vector<64x128xf32> -> vector<64x128xf32>
    %49 = vector.extract_strided_slice %12 {offsets = [0, 0, 0], sizes = [1, 64, 1], strides = [1, 1, 1]} : vector<2x64x1xf32> to vector<1x64x1xf32>
    %50 = vector.shape_cast %49 : vector<1x64x1xf32> to vector<64x1xf32>
    %51 = vector.broadcast %50 : vector<64x1xf32> to vector<64x128xf32>
    %52 = arith.addf %48, %51 : vector<64x128xf32>
    %53 = vector.extract_strided_slice %52 {offsets = [0, 0], sizes = [32, 128], strides = [1, 1]} : vector<64x128xf32> to vector<32x128xf32>
    %54 = vector.extract_strided_slice %52 {offsets = [32, 0], sizes = [32, 128], strides = [1, 1]} : vector<64x128xf32> to vector<32x128xf32>
    %cst_27 = arith.constant 0.526315808 : f32
    %55 = vector.broadcast %cst_27 : f32 to vector<32x128xf32>
    %56 = arith.mulf %53, %55 : vector<32x128xf32>
    %57 = math.tanh %56 : vector<32x128xf32>
    %cst_28 = arith.constant 1.900000e+00 : f32
    %58 = vector.broadcast %cst_28 : f32 to vector<32x128xf32>
    %59 = arith.mulf %58, %57 : vector<32x128xf32>
    %60 = math.exp %59 : vector<32x128xf32>
    %61 = arith.mulf %35, %60 : vector<32x128xf32>
    %62 = arith.addf %61, %54 : vector<32x128xf32>
    %cst_29 = arith.constant dense<0.000000e+00> : vector<128xf32>
    %63 = vector.multi_reduction <add>, %59, %cst_29 [0] : vector<32x128xf32> to vector<128xf32>
    %64 = vector.shape_cast %63 : vector<128xf32> to vector<1x128xf32>
    %65 = arith.addf %36, %64 : vector<1x128xf32>
    %66 = vector.extract_strided_slice %6 {offsets = [1, 0, 0], sizes = [1, 64, 32], strides = [1, 1, 1]} : vector<2x64x32xf32> to vector<1x64x32xf32>
    %67 = vector.shape_cast %66 : vector<1x64x32xf32> to vector<64x32xf32>
    %cst_30 = arith.constant dense<0.000000e+00> : vector<64x128xf32>
    %68 = tpu.matmul %67, %62, %cst_30 {dimension_numbers = #tpu.dot_dimension_numbers<[1], [0], [0], [1], [0, 0, 1, 1], [], []>} : vector<64x32xf32>, vector<32x128xf32>, vector<64x128xf32> -> vector<64x128xf32>
    %69 = vector.extract_strided_slice %8 {offsets = [1, 0, 0], sizes = [1, 64, 1], strides = [1, 1, 1]} : vector<2x64x1xf32> to vector<1x64x1xf32>
    %70 = vector.shape_cast %69 : vector<1x64x1xf32> to vector<64x1xf32>
    %71 = vector.broadcast %70 : vector<64x1xf32> to vector<64x128xf32>
    %72 = arith.addf %68, %71 : vector<64x128xf32>
    %cst_31 = arith.constant 0.000000e+00 : f32
    %73 = vector.broadcast %cst_31 : f32 to vector<64x128xf32>
    %74 = arith.maximumf %72, %73 : vector<64x128xf32>
    %75 = vector.extract_strided_slice %10 {offsets = [1, 0, 0], sizes = [1, 64, 64], strides = [1, 1, 1]} : vector<2x64x64xf32> to vector<1x64x64xf32>
    %76 = vector.shape_cast %75 : vector<1x64x64xf32> to vector<64x64xf32>
    %cst_32 = arith.constant dense<0.000000e+00> : vector<64x128xf32>
    %77 = tpu.matmul %76, %74, %cst_32 {dimension_numbers = #tpu.dot_dimension_numbers<[1], [0], [0], [1], [0, 0, 1, 1], [], []>} : vector<64x64xf32>, vector<64x128xf32>, vector<64x128xf32> -> vector<64x128xf32>
    %78 = vector.extract_strided_slice %12 {offsets = [1, 0, 0], sizes = [1, 64, 1], strides = [1, 1, 1]} : vector<2x64x1xf32> to vector<1x64x1xf32>
    %79 = vector.shape_cast %78 : vector<1x64x1xf32> to vector<64x1xf32>
    %80 = vector.broadcast %79 : vector<64x1xf32> to vector<64x128xf32>
    %81 = arith.addf %77, %80 : vector<64x128xf32>
    %82 = vector.extract_strided_slice %81 {offsets = [0, 0], sizes = [32, 128], strides = [1, 1]} : vector<64x128xf32> to vector<32x128xf32>
    %83 = vector.extract_strided_slice %81 {offsets = [32, 0], sizes = [32, 128], strides = [1, 1]} : vector<64x128xf32> to vector<32x128xf32>
    %cst_33 = arith.constant 0.526315808 : f32
    %84 = vector.broadcast %cst_33 : f32 to vector<32x128xf32>
    %85 = arith.mulf %82, %84 : vector<32x128xf32>
    %86 = math.tanh %85 : vector<32x128xf32>
    %cst_34 = arith.constant 1.900000e+00 : f32
    %87 = vector.broadcast %cst_34 : f32 to vector<32x128xf32>
    %88 = arith.mulf %87, %86 : vector<32x128xf32>
    %89 = math.exp %88 : vector<32x128xf32>
    %90 = arith.mulf %34, %89 : vector<32x128xf32>
    %91 = arith.addf %90, %83 : vector<32x128xf32>
    %cst_35 = arith.constant dense<0.000000e+00> : vector<128xf32>
    %92 = vector.multi_reduction <add>, %88, %cst_35 [0] : vector<32x128xf32> to vector<128xf32>
    %93 = vector.shape_cast %92 : vector<128xf32> to vector<1x128xf32>
    %94 = arith.addf %65, %93 : vector<1x128xf32>
    %95 = arith.mulf %91, %91 : vector<32x128xf32>
    %cst_36 = arith.constant dense<0.000000e+00> : vector<128xf32>
    %96 = vector.multi_reduction <add>, %95, %cst_36 [0] : vector<32x128xf32> to vector<128xf32>
    %97 = vector.shape_cast %96 : vector<128xf32> to vector<1x128xf32>
    %98 = arith.mulf %62, %62 : vector<32x128xf32>
    %cst_37 = arith.constant dense<0.000000e+00> : vector<128xf32>
    %99 = vector.multi_reduction <add>, %98, %cst_37 [0] : vector<32x128xf32> to vector<128xf32>
    %100 = vector.shape_cast %99 : vector<128xf32> to vector<1x128xf32>
    %101 = arith.addf %97, %100 : vector<1x128xf32>
    %cst_38 = arith.constant dense<0.000000e+00> : vector<128xf32>
    %102 = vector.multi_reduction <add>, %91, %cst_38 [0] : vector<32x128xf32> to vector<128xf32>
    %103 = vector.shape_cast %102 : vector<128xf32> to vector<1x128xf32>
    %cst_39 = arith.constant dense<0.000000e+00> : vector<128xf32>
    %104 = vector.multi_reduction <add>, %62, %cst_39 [0] : vector<32x128xf32> to vector<128xf32>
    %105 = vector.shape_cast %104 : vector<128xf32> to vector<1x128xf32>
    %106 = arith.addf %103, %105 : vector<1x128xf32>
    %cst_40 = arith.constant 5.000000e-01 : f32
    %107 = vector.broadcast %cst_40 : f32 to vector<1x128xf32>
    %108 = arith.mulf %107, %101 : vector<1x128xf32>
    %109 = arith.subf %108, %94 : vector<1x128xf32>
    %110 = tpu.concatenate %109, %106 in 0 : vector<1x128xf32>, vector<1x128xf32> -> vector<2x128xf32>
    %c0_41 = arith.constant 0 : index
    %c0_42 = arith.constant 0 : index
    %111 = vector.load %arg9[%c0_41, %c0_42] : memref<2x128xf32, #tpu.memory_space<vmem>>, vector<2x128xf32>
    tpu.vector_store %arg9[%c0_41, %c0_42], %110 {strides = array<i32>} : memref<2x128xf32, #tpu.memory_space<vmem>>, vector<2x128xf32>,
    return
  }
  func.func @transform_0(%arg0: i32, %arg1: memref<6xi32, #tpu.memory_space<smem>>) -> (i32, i32) {
    %c0_i32 = arith.constant 0 : i32
    %c0_i32_0 = arith.constant 0 : i32
    return %c0_i32, %arg0 : i32, i32
  }
  func.func @transform_1(%arg0: i32, %arg1: memref<6xi32, #tpu.memory_space<smem>>) -> (i32, i32, i32) {
    %0 = arith.index_cast %arg0 : i32 to index
    %1 = memref.load %arg1[%0] : memref<6xi32, #tpu.memory_space<smem>>
    %c0_i32 = arith.constant 0 : i32
    %c0_i32_0 = arith.constant 0 : i32
    %c0_i32_1 = arith.constant 0 : i32
    return %1, %c0_i32, %c0_i32_0 : i32, i32, i32
  }
  func.func @transform_2(%arg0: i32, %arg1: memref<6xi32, #tpu.memory_space<smem>>) -> (i32, i32, i32) {
    %0 = arith.index_cast %arg0 : i32 to index
    %1 = memref.load %arg1[%0] : memref<6xi32, #tpu.memory_space<smem>>
    %c0_i32 = arith.constant 0 : i32
    %c0_i32_0 = arith.constant 0 : i32
    %c0_i32_1 = arith.constant 0 : i32
    return %1, %c0_i32, %c0_i32_0 : i32, i32, i32
  }
  func.func @transform_3(%arg0: i32, %arg1: memref<6xi32, #tpu.memory_space<smem>>) -> (i32, i32, i32, i32) {
    %0 = arith.index_cast %arg0 : i32 to index
    %1 = memref.load %arg1[%0] : memref<6xi32, #tpu.memory_space<smem>>
    %c0_i32 = arith.constant 0 : i32
    %c0_i32_0 = arith.constant 0 : i32
    %c0_i32_1 = arith.constant 0 : i32
    %c0_i32_2 = arith.constant 0 : i32
    return %1, %c0_i32, %c0_i32_0, %c0_i32_1 : i32, i32, i32, i32
  }
  func.func @transform_4(%arg0: i32, %arg1: memref<6xi32, #tpu.memory_space<smem>>) -> (i32, i32, i32, i32) {
    %0 = arith.index_cast %arg0 : i32 to index
    %1 = memref.load %arg1[%0] : memref<6xi32, #tpu.memory_space<smem>>
    %c0_i32 = arith.constant 0 : i32
    %c0_i32_0 = arith.constant 0 : i32
    %c0_i32_1 = arith.constant 0 : i32
    %c0_i32_2 = arith.constant 0 : i32
    return %1, %c0_i32, %c0_i32_0, %c0_i32_1 : i32, i32, i32, i32
  }
  func.func @transform_5(%arg0: i32, %arg1: memref<6xi32, #tpu.memory_space<smem>>) -> (i32, i32, i32, i32) {
    %0 = arith.index_cast %arg0 : i32 to index
    %1 = memref.load %arg1[%0] : memref<6xi32, #tpu.memory_space<smem>>
    %c0_i32 = arith.constant 0 : i32
    %c0_i32_0 = arith.constant 0 : i32
    %c0_i32_1 = arith.constant 0 : i32
    %c0_i32_2 = arith.constant 0 : i32
    return %1, %c0_i32, %c0_i32_0, %c0_i32_1 : i32, i32, i32, i32
  }
  func.func @transform_6(%arg0: i32, %arg1: memref<6xi32, #tpu.memory_space<smem>>) -> (i32, i32, i32, i32) {
    %0 = arith.index_cast %arg0 : i32 to index
    %1 = memref.load %arg1[%0] : memref<6xi32, #tpu.memory_space<smem>>
    %c0_i32 = arith.constant 0 : i32
    %c0_i32_0 = arith.constant 0 : i32
    %c0_i32_1 = arith.constant 0 : i32
    %c0_i32_2 = arith.constant 0 : i32
    return %1, %c0_i32, %c0_i32_0, %c0_i32_1 : i32, i32, i32, i32
  }
  func.func @transform_7(%arg0: i32, %arg1: memref<6xi32, #tpu.memory_space<smem>>) -> (i32, i32) {
    %c0_i32 = arith.constant 0 : i32
    %c0_i32_0 = arith.constant 0 : i32
    return %c0_i32, %arg0 : i32, i32
  }
}

</mosaic_0001>

<bundles_post_ra>
// kernel: tpu_custom_call.1
= control target key start
LH: loop header
LB: loop body
LE: loop exit
PB: predicated region body
PF: predicated region fallthrough
CT: control target
= control target key end

     0   :  { %s2534_s0 = inlined_call_operand.vmem [shape: s32[6], index: 0, kind: input, shape index: {}]   ;;  %s2535_s1 = inlined_call_operand.vmem [shape: f32[3,768], index: 1, kind: input, shape index: {}]   ;;  %s2536_s2 = inlined_call_operand.vmem [shape: f32[3,64,3], index: 2, kind: input, shape index: {}]   ;;  %s2537_s3 = inlined_call_operand.vmem [shape: f32[3,64,1], index: 3, kind: input, shape index: {}]   ;;  %s2538_s4 = inlined_call_operand.vmem [shape: f32[3,2,64,32], index: 4, kind: input, shape index: {}]   ;;  %s2539_s5 = inlined_call_operand.vmem [shape: f32[3,2,64,1], index: 5, kind: input, shape index: {}]   ;;  %s2540_s6 = inlined_call_operand.vmem [shape: f32[3,2,64,64], index: 6, kind: input, shape index: {}]   ;;  %s2541_s7 = inlined_call_operand.vmem [shape: f32[3,2,64,1], index: 7, kind: input, shape index: {}]   ;;  %s2542_s8 = inlined_call_operand.hbm [shape: f32[2,768], index: 8, kind: output, shape index: {}]  }
   0x1   :  { %s13_s29 = sshll.u32 %s2534_s0, 4  ;;  %s14_s29 = int_to_ptr.vmem [resolvable:$true] %s13_s29 }
   0x2   :  { %s2062_s30 = scalar_lea.vmem %s14_s29, 16  ;;  %p2067_p1 = scmp.lt.s32.totalorder %s14_s29, %s14_s29 }
   0x3   :  { %p2063_p0 = scmp.ne.s32.totalorder %s14_s29, %s2062_s30  ;;  %p2068_p2 = scmp.lt.s32.totalorder %s2062_s30, %s2062_s30 }
   0x5   :  { %p2069_p3 = por %p2068_p2, %p2067_p1 }
   0x7   :  { %p2070_p4 = pnand %p2069_p3, %p2063_p0 }
   0x9   :  { %2073 = shalt.err (!%p2070_p4)  }
   0xa   :  { %s2140_s9 = smov [#allocation3]  }
   0xb   :  { %16 = dma.vmem_to_smem %s14_s29, 16, %s2140_s9, [#allocation2] }
   0xc   :  { %2118 = dma.done.wait [#allocation2], 16 }
   0xd   :  { %2119 = vsyncadd [#allocation2], 4294967280 }
   0xe   :  { %18 = sfence }
   0xf   :  { %19 = vsyncpa [#allocation5], 0 }
  0x10   :  { %21 = vsyncpa [#allocation5 + $0x1], 0  ;;  %s2193_s10 = smov 0   ;;  %s2195_s11 = smov 0  }
  0x11   :  { %s2197_s0 = smov 0   ;;  %s2199_s12 = smov 0  }
  0x12 LB: > { %s2214_s13 = sadd.s32 4294967295, %s2138_s12   ;;  %s1702_s14 = sadd.s32 4294967294, %s2138_s12   ;;  %s2138_s12 = sphi %s2199_s12, %s2548_s12   ;;  %s2134_s0 = sphi %s2197_s0, %s2547_s0   ;;  %s2130_s11 = sphi %s2195_s11, %s2546_s11   ;;  %s2126_s10 = sphi %s2193_s10, %s2545_s10  }
  0x13   : > { %s2218_s15 = sadd.s32 1, %s2138_s12   ;;  %s228_s16 = sadd.s32 1, %s2134_s0 }
  0x14   : > { %s225_s17 = ssub.s32 %s2138_s12, %s2218_s15  ;;  %p238_p5 = scmp.ne.s32.totalorder %s2134_s0, %s2130_s11 }
  0x15   : > { %p226_p6 = scmp.eq.s32.totalorder %s225_s17, 0  ;;  %p239_p7 = scmp.eq.s32.totalorder %s2214_s13, 5 }
  0x16   : > { %p244_p8 = scmp.ne.s32.totalorder %s2130_s11, %s2126_s10  ;;  %p245_p9 = scmp.eq.s32.totalorder %s1702_s14, 5 }
  0x17   : > { %s2229_s18 = scalar_select %p226_p6, %s2134_s0, %s228_s16  }
  0x18   : > { %p2231_p10 = por %p239_p7, %p238_p5  ;;  %p2235_p11 = por %p245_p9, %p244_p8 }
  0x19   : > { %p1705_p12 = scmp.ge.s32.totalorder %s2138_s12, 1  ;;  %p330_p13 = scmp.lt.s32.totalorder %s2138_s12, 7 }
  0x1b   : > { %p331_p0 = pnand %p1705_p12, %p330_p13 }
  0x1c   : > { %s401_s21 = sld [smem:[#allocation3 + %s2214_s13]] (!%p331_p0)  ;;  %v2141_v0 = vmov (!%p331_p0), 2   ;;  %v2142_v1 = vmov (!%p331_p0), 1   ;;  %v2143_v5 = vmov (!%p331_p0), 0   ;;  %vm776_vm0 = vcmask (!%p331_p0), 261120   ;;  %p397_p6 = scmp.lt.s32.totalorder (!%p331_p0), %s2214_s13, 5 }
  0x1d   : > { %334 = sbr.rel (%p331_p0) target bundleno = 1235 (0x4d3), region = 48  ;;  %2014 = vset.pattern.permute.xlu0 (!%p331_p0), %v2141_v0  ;;  %2013 = vset.pattern.permute.xlu1 (!%p331_p0), %v2142_v1  ;;  %s408_s22 = sld [smem:[#allocation3 + %s2214_s13]] (!%p331_p0)  ;;  %v564_v35 = vlaneseq (!%p331_p0)  ;;  %vm954_vm1 = vcmask (!%p331_p0), 523264   ;;  %vm1554_vm2 = vcmask (!%p331_p0), 1040384  }
  0x1e   : > { %s422_s27 = sld [smem:[#allocation3 + %s2214_s13]] (!%p331_p0) }
  0x1f   : > { %s436_s16 = sld [smem:[#allocation3 + %s2214_s13]] (!%p331_p0)  ;;  %v565_v37 = vshrl.u32 (!%p331_p0), %v564_v35, 7 }
  0x20   : > { %s429_s25 = sld [smem:[#allocation3 + %s2214_s13]] (!%p331_p0) }
  0x21   : > { %v566_v39 = vsub.s32 (!%p331_p0), 0, %v565_v37  ;;  %v610_v41 = vsub.s32 (!%p331_p0), 1, %v565_v37  ;;  %v662_v44 = vsub.s32 (!%p331_p0), 2, %v565_v37 }
  0x22   : > { %p402_p1 = scmp.lt.s32.totalorder (!%p331_p0), %s401_s21, 2 }
  0x23   : > { %p409_p2 = scmp.lt.s32.totalorder (!%p331_p0), %s408_s22, 2 }
  0x24   : > { %s2550_s21 = smov (!%p402_p1, %s401_s21), 2  ;;  %p423_p3 = scmp.lt.s32.totalorder %s422_s27, 2 }
  0x25   : > { %s1756_s23 = sshll.u32 %s2550_s21, 6  ;;  %s2552_s22 = smov (!%p409_p2, %s408_s22), 2 }
  0x26   : > { %s2248_s26 = scalar_lea.vmem %s2536_s2, %s1756_s23  ;;  %s1757_s28 = sshll.u32 %s2552_s22, 6 }
  0x27   : > { %v444_v2 = vld [vmem:[%s2248_s26] sm:$0xff]  ;;  %v446_v3 = vld [vmem:[%s2248_s26 + $0x10] sm:$0xff]  ;;  %v445_v4 = vld [vmem:[%s2248_s26 + $0x8] sm:$0xff]  ;;  %s2554_s27 = smov (!%p423_p3, %s422_s27), 2  ;;  %s2261_s9 = scalar_lea.vmem %s2537_s3, %s1757_s28 }
  0x28   : > { %629 = vperm.xlu0 %2014, %v444_v2   ;;  %577 = vperm.xlu1 %2013, %v444_v2   ;;  %v447_v6 = vld [vmem:[%s2248_s26 + $0x18] sm:$0xff]  ;;  %s1759_s14 = sshll.u32 %s2554_s27, 7  ;;  %v453_v7 = vld [vmem:[%s2261_s9 + $0x8] sm:$0xff]  ;;  %p437_p4 = scmp.lt.s32.totalorder %s436_s16, 2  ;;  %v452_v11 = vld [vmem:[%s2261_s9] sm:$0xff] }
  0x29   : > { %s2269_s22 = scalar_lea.vmem %s2539_s5, %s1759_s14  ;;  %v454_v13 = vld [vmem:[%s2261_s9 + $0x10] sm:$0xff]  ;;  %s415_s28 = sld [smem:[#allocation3 + %s2214_s13]]  ;;  %v455_v15 = vld [vmem:[%s2261_s9 + $0x18] sm:$0xff]  ;;  %v448_v18 = vld [vmem:[%s2248_s26 + $0x20] sm:$0xff] }
  0x2a   : > { %v476_v8 = vld [vmem:[%s2269_s22] sm:$0xff]  ;;  %v478_v9 = vld [vmem:[%s2269_s22 + $0x10] sm:$0xff]  ;;  %s2556_s16 = smov (!%p437_p4, %s436_s16), 2  ;;  %v477_v17 = vld [vmem:[%s2269_s22 + $0x8] sm:$0xff]  ;;  %p430_p7 = scmp.lt.s32.totalorder %s429_s25, 2 }
  0x2b   : > { %v480_v10 = vld [vmem:[%s2269_s22 + $0x20] sm:$0xff]  ;;  %s1761_s23 = sshll.u32 %s2556_s16, 7  ;;  %v482_v12 = vld [vmem:[%s2269_s22 + $0x30] sm:$0xff]  ;;  %v479_v19 = vld [vmem:[%s2269_s22 + $0x18] sm:$0xff] }
  0x2c   : > { %637 = vperm.xlu0 %2014, %v446_v3   ;;  %581 = vperm.xlu1 %2013, %v445_v4   ;;  %s2282_s27 = scalar_lea.vmem %s2541_s7, %s1761_s23  ;;  %v481_v21 = vld [vmem:[%s2269_s22 + $0x28] sm:$0xff]  ;;  %v483_v22 = vld [vmem:[%s2269_s22 + $0x38] sm:$0xff]  ;;  %v450_v23 = vld [vmem:[%s2248_s26 + $0x30] sm:$0xff]  ;;  %s2560_s25 = smov (!%p430_p7, %s429_s25), 2 }
  0x2d   : > { %v508_v14 = vld [vmem:[%s2282_s27] sm:$0xff]  ;;  %v510_v16 = vld [vmem:[%s2282_s27 + $0x10] sm:$0xff]  ;;  %v509_v24 = vld [vmem:[%s2282_s27 + $0x8] sm:$0xff] }
  0x2e   : > { %v511_v25 = vld [vmem:[%s2282_s27 + $0x18] sm:$0xff]  ;;  %v449_v26 = vld [vmem:[%s2248_s26 + $0x28] sm:$0xff]  ;;  %v456_v28 = vld [vmem:[%s2261_s9 + $0x20] sm:$0xff] }
  0x2f   : > { %p416_p5 = scmp.lt.s32.totalorder %s415_s28, 2  ;;  %v451_v27 = vld [vmem:[%s2248_s26 + $0x38] sm:$0xff]  ;;  %v457_v29 = vld [vmem:[%s2261_s9 + $0x28] sm:$0xff]  ;;  %v484_v35 = vld [vmem:[%s2269_s22 + $0x40] sm:$0xff] }
  0x30   : > { %2018 = vset.pattern.permute.xlu0 %v2143_v5  ;;  %2015 = vset.pattern.permute.xlu1 %v2141_v0  ;;  %s398_s26 = scalar_select %p397_p6, %s2214_s13, 5  ;;  %v486_v37 = vld [vmem:[%s2269_s22 + $0x50] sm:$0xff] }
  0x31   : > { %526 = vperm.xlu0 %2018, %v444_v2   ;;  %633 = vperm.xlu1 %2015, %v445_v4   ;;  %s2558_s28 = smov (!%p416_p5, %s415_s28), 2 }
  0x32   : > { %s1758_s29 = sshll.u32 %s2558_s28, 7  ;;  %s1707_s17 = sshll.u32 %s398_s26, 2 }
  0x33   : > { %s2294_s16 = scalar_lea.vmem %s2538_s4, %s1758_s29  ;;  %s400_s24 = scalar_lea.vmem %s2535_s1, %s1707_s17 }
  0x34   : > { %v460_v20 = vld [vmem:[%s2294_s16] sm:$0xff]  ;;  %s1760_s28 = sshll.u32 %s2560_s25, 7 }
  0x35   : > { %531 = vperm.xlu0 %2018, %v445_v4   ;;  %2016 = vset.pattern.permute.xlu1 %v2143_v5  ;;  %v443_v42 = vld [vmem:[%s400_s24] sm:$0x7]  ;;  %s2377_s14 = scalar_lea.vmem %s2540_s6, %s1760_s28 }
  0x36   : > { %536 = vperm.xlu1 %2016, %v446_v3   ;;  %1826 = vmatprep.mubr.msk.f32.mxu0 %vm776_vm0, %v460_v20  ;;  %v2321_v45 = vrot.slane %v443_v42, %v566_v39  ;;  %v2323_v46 = vrot.slane %v443_v42, %v610_v41  ;;  %v2326_v50 = vrot.slane %v443_v42, %v662_v44  ;;  %v488_v39 = vld [vmem:[%s2269_s22 + $0x60] sm:$0xff]  ;;  %v490_v41 = vld [vmem:[%s2269_s22 + $0x70] sm:$0xff]  ;;  %v491_v42 = vld [vmem:[%s2269_s22 + $0x78] sm:$0xff] }
  0x37   : > { %v517_v44 = vld [vmem:[%s2282_s27 + $0x48] sm:$0xff] }
  0x39   : > { %541 = vperm.xlu0 %2018, %v447_v6  }
  0x3a   : > { %2017 = vset.pattern.permute.xlu1 %v2142_v1 }
  0x3b   : > { %585 = vperm.xlu1 %2017, %v446_v3  }
  0x3d   : > { %687 = vperm.xlu0 %2018, %v453_v7  }
  0x3f   : > { %589 = vperm.xlu1 %2017, %v447_v6  }
  0x41   : > { %738 = vperm.xlu0 %2018, %v476_v8  }
  0x43   : > { %2019 = vset.pattern.permute.xlu1 %v2141_v0 }
  0x44   : > { %641 = vperm.xlu1 %2019, %v447_v6  }
  0x45   : > { %748 = vperm.xlu0 %2018, %v478_v9  }
  0x48   : > { %2020 = vset.pattern.permute.xlu1 %v2143_v5 }
  0x49   : > { %758 = vperm.xlu0 %2018, %v480_v10   ;;  %682 = vperm.xlu1 %2020, %v452_v11  }
  0x4d   : > { %768 = vperm.xlu0 %2018, %v482_v12   ;;  %692 = vperm.xlu1 %2020, %v454_v13  }
  0x51   : > { %916 = vperm.xlu0 %2018, %v508_v14   ;;  %697 = vperm.xlu1 %2020, %v455_v15  }
  0x55   : > { %926 = vperm.xlu0 %2018, %v510_v16   ;;  %743 = vperm.xlu1 %2020, %v477_v17  }
  0x59   : > { %546 = vperm.xlu0 %2018, %v448_v18   ;;  %753 = vperm.xlu1 %2020, %v479_v19  }
  0x5d   : > { %2021 = vset.pattern.permute.xlu0 %v2142_v1  ;;  %763 = vperm.xlu1 %2020, %v481_v21   ;;  %v461_v21 = vld [vmem:[%s2294_s16 + $0x8] sm:$0xff] }
  0x5e   : > { %593 = vperm.xlu0 %2021, %v448_v18  }
  0x61   : > { %773 = vperm.xlu1 %2020, %v483_v22   ;;  %v462_v22 = vld [vmem:[%s2294_s16 + $0x10] sm:$0xff] }
  0x62   : > { %601 = vperm.xlu0 %2021, %v450_v23  }
  0x65   : > { %921 = vperm.xlu1 %2020, %v509_v24   ;;  %v464_v24 = vld [vmem:[%s2294_s16 + $0x20] sm:$0xff] }
  0x66   : > { %2025 = vset.pattern.permute.xlu0 %v2141_v0 }
  0x67   : > { %649 = vperm.xlu0 %2025, %v449_v26  }
  0x69   : > { %931 = vperm.xlu1 %2020, %v511_v25   ;;  %v465_v25 = vld [vmem:[%s2294_s16 + $0x28] sm:$0xff] }
  0x6b   : > { %657 = vperm.xlu0 %2025, %v451_v27  }
  0x6d   : > { %551 = vperm.xlu1 %2020, %v449_v26  }
  0x6f   : > { %2029 = vset.pattern.permute.xlu0 %v2143_v5 }
  0x71   : > { %2022 = vset.pattern.permute.xlu1 %v2142_v1 }
  0x72   : > { %597 = vperm.xlu1 %2022, %v449_v26   ;;  %v466_v26 = vld [vmem:[%s2294_s16 + $0x30] sm:$0xff] }
  0x76   : > { %2023 = vset.pattern.permute.xlu1 %v2141_v0 }
  0x77   : > { %645 = vperm.xlu1 %2023, %v448_v18  }
  0x7b   : > { %2024 = vset.pattern.permute.xlu1 %v2143_v5 }
  0x7c   : > { %556 = vperm.xlu1 %2024, %v450_v23  }
  0x80   : > { %561 = vperm.xlu1 %2024, %v451_v27  }
  0x84   : > { %2026 = vset.pattern.permute.xlu1 %v2142_v1 }
  0x85   : > { %605 = vperm.xlu1 %2026, %v451_v27   ;;  %v467_v27 = vld [vmem:[%s2294_s16 + $0x38] sm:$0xff] }
  0x89   : > { %2027 = vset.pattern.permute.xlu1 %v2141_v0 }
  0x8a   : > { %653 = vperm.xlu1 %2027, %v450_v23   ;;  %v463_v23 = vld [vmem:[%s2294_s16 + $0x18] sm:$0xff] }
  0x8e   : > { %2028 = vset.pattern.permute.xlu1 %v2143_v5 }
  0x8f   : > { %702 = vperm.xlu1 %2028, %v456_v28   ;;  %v492_v28 = vld [vmem:[%s2377_s14] sm:$0xff] }
  0x90   : > { %1854 = vmatprep.mubr.msk.f32.mxu1 %vm954_vm1, %v492_v28 }
  0x93   : > { %707 = vperm.xlu1 %2028, %v457_v29   ;;  %v459_v29 = vld [vmem:[%s2261_s9 + $0x38] sm:$0xff] }
  0x97   : > { %717 = vperm.xlu1 %2028, %v459_v29  }
  0xa7   : > { %v578_v30 = vpop.permute.xlu1 %577  ;;  %v630_v31 = vpop.permute.xlu0 %629 }
  0xa8   : > { %v612_v53 = vmul.f32 %v2323_v46, %v578_v30  ;;  %v664_v55 = vmul.f32 %v2326_v50, %v630_v31  ;;  %v458_v30 = vld [vmem:[%s2261_s9 + $0x30] sm:$0xff]  ;;  %v512_v31 = vld [vmem:[%s2282_s27 + $0x20] sm:$0xff]  ;;  %s394_s9 = sand.u32 1, %s2130_s11  }
  0xa9   : > { %712 = vperm.xlu0 %2029, %v458_v30   ;;  %936 = vperm.xlu1 %2028, %v512_v31   ;;  %s1558_s24 = scalar_lea.sflag [#allocation5], %s394_s9 }
  0xab   : > { %v582_v32 = vpop.permute.xlu1 %581  ;;  %v638_v33 = vpop.permute.xlu0 %637 }
  0xac   : > { %v613_v51 = vmul.f32 %v2323_v46, %v582_v32  ;;  %v666_v6 = vmul.f32 %v2326_v50, %v638_v33  ;;  %v513_v32 = vld [vmem:[%s2282_s27 + $0x28] sm:$0xff]  ;;  %v514_v33 = vld [vmem:[%s2282_s27 + $0x30] sm:$0xff] }
  0xad   : > { %941 = vperm.xlu0 %2029, %v513_v32   ;;  %946 = vperm.xlu1 %2028, %v514_v33  }
  0xb0   : > { %v634_v34 = vpop.permute.xlu1 %633  ;;  %v527_v36 = vpop.permute.xlu0 %526 }
  0xb1   : > { %v568_v52 = vmul.f32 %v2321_v45, %v527_v36  ;;  %v665_v57 = vmul.f32 %v2326_v50, %v634_v34  ;;  %v515_v34 = vld [vmem:[%s2282_s27 + $0x38] sm:$0xff]  ;;  %v485_v36 = vld [vmem:[%s2269_s22 + $0x48] sm:$0xff]  ;;  %1124 = vperm.xlu1 %2028, %v484_v35   ;;  %v494_v35 = vld [vmem:[%s2377_s14 + $0x10] sm:$0xff] }
  0xb2   : > { %951 = vperm.xlu0 %2029, %v515_v34   ;;  %v493_v34 = vld [vmem:[%s2377_s14 + $0x8] sm:$0xff] }
  0xb3   : > { %v620_v56 = vadd.f32 %v612_v53, %v568_v52  ;;  %v522_v52 = vld [vmem:[%s2282_s27 + $0x70] sm:$0xff]  ;;  %v523_v53 = vld [vmem:[%s2282_s27 + $0x78] sm:$0xff] }
  0xb4   : > { %v532_v40 = vpop.permute.xlu0 %531 }
  0xb5   : > { %v537_v38 = vpop.permute.xlu1 %536  ;;  %v569_v47 = vmul.f32 %v2321_v45, %v532_v40  ;;  %v672_v0 = vadd.f32 %v664_v55, %v620_v56  ;;  %1134 = vperm.xlu1 %2028, %v486_v37   ;;  %v489_v40 = vld [vmem:[%s2269_s22 + $0x68] sm:$0xff]  ;;  %v496_v37 = vld [vmem:[%s2377_s14 + $0x20] sm:$0xff] }
  0xb6   : > { %v570_v62 = vmul.f32 %v2321_v45, %v537_v38  ;;  %1129 = vperm.xlu0 %2029, %v485_v36   ;;  %v487_v38 = vld [vmem:[%s2269_s22 + $0x58] sm:$0xff]  ;;  %s1706_s22 = sshll.u32 %s394_s9, 1 }
  0xb7   : > { %v621_v54 = vadd.f32 %v613_v51, %v569_v47  ;;  %v518_v47 = vld [vmem:[%s2282_s27 + $0x50] sm:$0xff]  ;;  %v521_v51 = vld [vmem:[%s2282_s27 + $0x68] sm:$0xff]  ;;  %v495_v36 = vld [vmem:[%s2377_s14 + $0x18] sm:$0xff] }
  0xb8   : > { %v542_v48 = vpop.permute.xlu0 %541 }
  0xb9   : > { %v673_v61 = vadd.f32 %v665_v57, %v621_v54  ;;  %v571_v2 = vmul.f32 %v2321_v45, %v542_v48  ;;  %1144 = vperm.xlu1 %2028, %v488_v39   ;;  %v519_v48 = vld [vmem:[%s2282_s27 + $0x58] sm:$0xff]  ;;  %v498_v39 = vld [vmem:[%s2377_s14 + $0x30] sm:$0xff] }
  0xba   : > { %v586_v43 = vpop.permute.xlu1 %585  ;;  %1139 = vperm.xlu0 %2029, %v487_v38   ;;  %v497_v38 = vld [vmem:[%s2377_s14 + $0x28] sm:$0xff] }
  0xbb   : > { %v614_v60 = vmul.f32 %v2323_v46, %v586_v43  ;;  %v516_v43 = vld [vmem:[%s2282_s27 + $0x40] sm:$0xff] }
  0xbc   : > { %v688_v59 = vpop.permute.xlu0 %687 }
  0xbd   : > { %v2335_v63 = vadd.f32 %v688_v59, %v673_v61  ;;  %v622_v3 = vadd.f32 %v614_v60, %v570_v62  ;;  %1154 = vperm.xlu1 %2028, %v490_v41   ;;  %v468_v41 = vld [vmem:[%s2294_s16 + $0x40] sm:$0xff] }
  0xbe   : > { %v590_v49 = vpop.permute.xlu1 %589  ;;  %1149 = vperm.xlu0 %2029, %v489_v40   ;;  %v499_v40 = vld [vmem:[%s2377_s14 + $0x38] sm:$0xff] }
  0xbf   : > { %v615_v4 = vmul.f32 %v2323_v46, %v590_v49  ;;  %v729_v7 = vmax.f32 %v2335_v63, 0.0  ;;  %v674_v12 = vadd.f32 %v666_v6, %v622_v3  ;;  %v520_v49 = vld [vmem:[%s2282_s27 + $0x60] sm:$0xff]  ;;  %s1753_s27 = sshll.u32 %s2214_s13, 5  ;;  %s2144_s13 = smov [#allocation4]  }
  0xc0   : > { %v739_v55 = vpop.permute.xlu0 %738  ;;  %s2492_s23 = scalar_lea.hbm %s2542_s8, %s1753_s27  ;;  %s2078_s28 = sshll.u32 %s2144_s13, 4  ;;  %s2079_s28 = int_to_ptr.vmem [resolvable:$false] %s2078_s28 }
  0xc1   : > { %v623_v11 = vadd.f32 %v615_v4, %v571_v2  ;;  %1301 = vperm.xlu1 %2028, %v516_v43   ;;  %s2080_s29 = scalar_lea.vmem %s2079_s28, 64 }
  0xc2   : > { %1159 = vperm.xlu0 %2029, %v491_v42  }
  0xc3   : > { %v642_v58 = vpop.permute.xlu1 %641 }
  0xc4   : > { %v667_v8 = vmul.f32 %v2326_v50, %v642_v58  ;;  %v749_v58 = vpop.permute.xlu0 %748 }
  0xc5   : > { %1311 = vperm.xlu1 %2028, %v518_v47  }
  0xc6   : > { %v675_v15 = vadd.f32 %v667_v8, %v623_v11  ;;  %1306 = vperm.xlu0 %2029, %v517_v44  }
  0xc8   : > { %v683_v1 = vpop.permute.xlu1 %682 }
  0xc9   : > { %v2339_v5 = vadd.f32 %v683_v1, %v672_v0  ;;  %1321 = vperm.xlu1 %2028, %v520_v49  }
  0xca   : > { %1316 = vperm.xlu0 %2029, %v519_v48  }
  0xcb   : > { %v728_v9 = vmax.f32 %v2339_v5, 0.0 }
  0xcc   : > { %v693_v10 = vpop.permute.xlu1 %692 }
  0xcd   : > { %v1914_v13 = vpack.c.bf16 %v729_v7, %v728_v9  ;;  %v2349_v14 = vadd.f32 %v693_v10, %v674_v12  ;;  %1331 = vperm.xlu1 %2028, %v522_v52   ;;  %v759_v10 = vpop.permute.xlu0 %758 }
  0xce   : > { %1326 = vperm.xlu0 %2029, %v521_v51  }
  0xcf   : > { %1915 = vmatprep.subr.bf16.mxu0 %v1914_v13  ;;  %v730_v18 = vmax.f32 %v2349_v14, 0.0 }
  0xd0   : > { %v698_v16 = vpop.permute.xlu1 %697  ;;  %1917 = vmatpush3.bf16.msra.mxu0 %v1914_v13 }
  0xd1   : > { %v2351_v17 = vadd.f32 %v698_v16, %v675_v15 }
  0xd2   : > { %1336 = vperm.xlu0 %2029, %v523_v53  }
  0xd3   : > { %v731_v19 = vmax.f32 %v2351_v17, 0.0 }
  0xd4   : > { %v744_v54 = vpop.permute.xlu1 %743 }
  0xd5   : > { %v1918_v20 = vpack.c.bf16 %v731_v19, %v730_v18 }
  0xd7   : > { %1919 = vmatprep.subr.bf16.mxu0 %v1918_v20 }
  0xd8   : > { %1921 = vmatpush3.bf16.msra.mxu0 %v1918_v20  ;;  %v754_v56 = vpop.permute.xlu1 %753 }
  0xdb   : > { %1827 = vmatmul.mubr.msk.f32.vlgmr.msra.gmra.mrb[0].mxu0 %vm776_vm0, %v461_v21 }
  0xdc   : > { %1829 = vmatprep.mubr.msk.f32.mxu0 %vm776_vm0, %v462_v22  ;;  %v764_v4 = vpop.permute.xlu1 %763 }
  0xdf   : > { %1830 = vmatmul.mubr.msk.f32.gmra.mrb[2].mxu0 %vm776_vm0, %v463_v23 }
  0xe0   : > { %1832 = vmatprep.mubr.msk.f32.mxu0 %vm776_vm0, %v464_v24  ;;  %v774_v23 = vpop.permute.xlu1 %773 }
  0xe3   : > { %1833 = vmatmul.mubr.msk.f32.gmra.mrb[4].mxu0 %vm776_vm0, %v465_v25 }
  0xe4   : > { %1835 = vmatprep.mubr.msk.f32.mxu0 %vm776_vm0, %v466_v26  ;;  %v769_v26 = vpop.permute.xlu0 %768  ;;  %v922_v42 = vpop.permute.xlu1 %921 }
  0xe7   : > { %1836 = vmatmul.mubr.msk.f32.gmra.mrb[6].mxu0 %vm776_vm0, %v467_v27 }
  0xe8   : > { %1874 = vmatprep.mubr.msk.f32.mxu0 %vm776_vm0, %v468_v41  ;;  %v932_v43 = vpop.permute.xlu1 %931  ;;  %v917_v48 = vpop.permute.xlu0 %916 }
  0xec   : > { %v552_v44 = vpop.permute.xlu1 %551  ;;  %v927_v52 = vpop.permute.xlu0 %926 }
  0xf1   : > { %v598_v47 = vpop.permute.xlu1 %597 }
  0xf6   : > { %v646_v49 = vpop.permute.xlu1 %645 }
  0xfb   : > { %v557_v51 = vpop.permute.xlu1 %556 }
  0xff   : > { %v562_v53 = vpop.permute.xlu1 %561 }
 0x1ae   : > { %v1828_v57 = vpop.f32.mrb[0].mxu0 }
 0x1af   : > { %v873_v59 = vadd.f32 %v1828_v57, %v744_v54  ;;  %v867_v60 = vpop.f32.mrb[1].mxu0  ;;  %v547_v54 = vpop.permute.xlu0 %546 }
 0x1b0   : > { %v868_v61 = vadd.f32 %v867_v60, %v739_v55  ;;  %v606_v55 = vpop.permute.xlu1 %605  ;;  %v572_v41 = vmul.f32 %v2321_v45, %v547_v54 }
 0x1b1   : > { %v907_v62 = vmax.f32 %v873_v59, 0.0 }
 0x1b2   : > { %v906_v0 = vmax.f32 %v868_v61, 0.0  ;;  %v1831_v1 = vpop.f32.mrb[2].mxu0 }
 0x1b3   : > { %v883_v2 = vadd.f32 %v1831_v1, %v754_v56  ;;  %v877_v3 = vpop.f32.mrb[3].mxu0  ;;  %v594_v57 = vpop.permute.xlu0 %593 }
 0x1b4   : > { %v878_v6 = vadd.f32 %v877_v3, %v749_v58  ;;  %v1922_v8 = vpack.c.bf16 %v907_v62, %v906_v0 }
 0x1b5   : > { %v909_v11 = vmax.f32 %v883_v2, 0.0 }
 0x1b6   : > { %v908_v12 = vmax.f32 %v878_v6, 0.0  ;;  %v1834_v13 = vpop.f32.mrb[4].mxu0  ;;  %1923 = vmatprep.subr.bf16.mxu1 %v1922_v8 }
 0x1b7   : > { %v893_v15 = vadd.f32 %v1834_v13, %v764_v4  ;;  %v887_v16 = vpop.f32.mrb[5].mxu0  ;;  %1925 = vmatpush3.bf16.msra.mxu1 %v1922_v8  ;;  %v602_v1 = vpop.permute.xlu0 %601 }
 0x1b8   : > { %v1926_v20 = vpack.c.bf16 %v909_v11, %v908_v12  ;;  %v888_v21 = vadd.f32 %v887_v16, %v759_v10  ;;  %v654_v4 = vpop.permute.xlu1 %653 }
 0x1b9   : > { %v911_v22 = vmax.f32 %v893_v15, 0.0 }
 0x1ba   : > { %v910_v24 = vmax.f32 %v888_v21, 0.0  ;;  %v1837_v25 = vpop.f32.mrb[6].mxu0  ;;  %1927 = vmatprep.subr.bf16.mxu1 %v1926_v20 }
 0x1bb   : > { %v903_v27 = vadd.f32 %v1837_v25, %v774_v23  ;;  %v897_v28 = vpop.f32.mrb[7].mxu0  ;;  %1929 = vmatpush3.bf16.msra.mxu1 %v1926_v20  ;;  %v650_v13 = vpop.permute.xlu0 %649 }
 0x1bc   : > { %v1930_v29 = vpack.c.bf16 %v911_v22, %v910_v24  ;;  %v898_v30 = vadd.f32 %v897_v28, %v769_v26  ;;  %v703_v15 = vpop.permute.xlu1 %702  ;;  %v617_v22 = vmul.f32 %v2323_v46, %v598_v47  ;;  %v573_v26 = vmul.f32 %v2321_v45, %v552_v44 }
 0x1bd   : > { %v913_v31 = vmax.f32 %v903_v27, 0.0  ;;  %v575_v27 = vmul.f32 %v2321_v45, %v562_v53  ;;  %v619_v28 = vmul.f32 %v2323_v46, %v606_v55 }
 0x1be   : > { %v912_v32 = vmax.f32 %v898_v30, 0.0  ;;  %1931 = vmatprep.subr.bf16.mxu1 %v1930_v29  ;;  %v616_v30 = vmul.f32 %v2323_v46, %v594_v57 }
 0x1bf   : > { %1933 = vmatpush3.bf16.msra.mxu1 %v1930_v29  ;;  %v658_v24 = vpop.permute.xlu0 %657  ;;  %v627_v44 = vadd.f32 %v619_v28, %v575_v27 }
 0x1c0   : > { %v1934_v33 = vpack.c.bf16 %v913_v31, %v912_v32  ;;  %v618_v31 = vmul.f32 %v2323_v46, %v602_v1  ;;  %v574_v32 = vmul.f32 %v2321_v45, %v557_v51  ;;  %v671_v46 = vmul.f32 %v2326_v50, %v658_v24 }
 0x1c2   : > { %1935 = vmatprep.subr.bf16.mxu1 %v1934_v33  ;;  %v626_v51 = vadd.f32 %v618_v31, %v574_v32  ;;  %v679_v54 = vadd.f32 %v671_v46, %v627_v44  ;;  %v470_v46 = vld [vmem:[%s2294_s16 + $0x50] sm:$0xff] }
 0x1c3   : > { %1937 = vmatpush3.bf16.msra.mxu1 %v1934_v33  ;;  %v708_v33 = vpop.permute.xlu1 %707  ;;  %v713_v55 = vpop.permute.xlu0 %712 }
 0x1c6   : > { %1855 = vmatmul.mubr.msk.f32.vlgmr.msra.gmra.mrb[0].mxu1 %vm954_vm1, %v493_v34 }
 0x1c7   : > { %1857 = vmatprep.mubr.msk.f32.mxu1 %vm954_vm1, %v494_v35  ;;  %v718_v53 = vpop.permute.xlu1 %717  ;;  %v942_v1 = vpop.permute.xlu0 %941 }
 0x1ca   : > { %1858 = vmatmul.mubr.msk.f32.gmra.mrb[2].mxu1 %vm954_vm1, %v495_v36  ;;  %v625_v36 = vadd.f32 %v617_v22, %v573_v26 }
 0x1cb   : > { %1860 = vmatprep.mubr.msk.f32.mxu1 %vm954_vm1, %v496_v37  ;;  %v669_v37 = vmul.f32 %v2326_v50, %v650_v13  ;;  %v952_v28 = vpop.permute.xlu0 %951 }
 0x1cd   : > { %v677_v57 = vadd.f32 %v669_v37, %v625_v36 }
 0x1ce   : > { %1861 = vmatmul.mubr.msk.f32.gmra.mrb[4].mxu1 %vm954_vm1, %v497_v38 }
 0x1cf   : > { %1863 = vmatprep.mubr.msk.f32.mxu1 %vm954_vm1, %v498_v39 }
 0x1d2   : > { %1864 = vmatmul.mubr.msk.f32.gmra.mrb[6].mxu1 %vm954_vm1, %v499_v40 }
 0x299   : > { %v1856_v56 = vpop.f32.mrb[0].mxu1 }
 0x29a   : > { %v1051_v58 = vadd.f32 %v1856_v56, %v922_v42  ;;  %v1045_v59 = vpop.f32.mrb[1].mxu1  ;;  %v668_v42 = vmul.f32 %v2326_v50, %v646_v49  ;;  %v725_v49 = vadd.f32 %v708_v33, %v677_v57  ;;  %v1130_v57 = vpop.permute.xlu0 %1129 }
 0x29b   : > { %v1046_v60 = vadd.f32 %v1045_v59, %v917_v48  ;;  %v624_v48 = vadd.f32 %v616_v30, %v572_v41 }
 0x29c   : > { %v1085_v61 = vmul.f32 0.5263158, %v1051_v58 }
 0x29d   : > { %v1084_v62 = vmul.f32 0.5263158, %v1046_v60  ;;  %v1859_v0 = vpop.f32.mrb[2].mxu1  ;;  %v676_v45 = vadd.f32 %v668_v42, %v624_v48  ;;  %v472_v48 = vld [vmem:[%s2294_s16 + $0x60] sm:$0xff] }
 0x29e   : > { %2030 = vtanh.f32 %v1085_v61  ;;  %v1061_v2 = vadd.f32 %v1859_v0, %v932_v43  ;;  %v1055_v3 = vpop.f32.mrb[3].mxu1  ;;  %v937_v0 = vpop.permute.xlu1 %936 }
 0x29f   : > { %2032 = vtanh.f32 %v1084_v62  ;;  %v1056_v6 = vadd.f32 %v1055_v3, %v927_v52  ;;  %v670_v52 = vmul.f32 %v2326_v50, %v654_v4  ;;  %v724_v61 = vadd.f32 %v703_v15, %v676_v45 }
 0x2a0   : > { %v1087_v8 = vmul.f32 0.5263158, %v1061_v2  ;;  %v733_v2 = vmax.f32 %v725_v49, 0.0  ;;  %v727_v3 = vadd.f32 %v718_v53, %v679_v54  ;;  %v475_v53 = vld [vmem:[%s2294_s16 + $0x78] sm:$0xff] }
 0x2a1   : > { %v1086_v10 = vmul.f32 0.5263158, %v1056_v6  ;;  %v1862_v11 = vpop.f32.mrb[4].mxu1  ;;  %v678_v62 = vadd.f32 %v670_v52, %v626_v51  ;;  %v732_v4 = vmax.f32 %v724_v61, 0.0  ;;  %v473_v51 = vld [vmem:[%s2294_s16 + $0x68] sm:$0xff]  ;;  %v474_v52 = vld [vmem:[%s2294_s16 + $0x70] sm:$0xff] }
 0x2a2   : > { %2034 = vtanh.f32 %v1087_v8  ;;  %v1065_v12 = vpop.f32.mrb[5].mxu1  ;;  %v947_v27 = vpop.permute.xlu1 %946 }
 0x2a3   : > { %2036 = vtanh.f32 %v1086_v10  ;;  %v726_v6 = vadd.f32 %v713_v55, %v678_v62  ;;  %v1071_v10 = vadd.f32 %v1862_v11, %v942_v1  ;;  %v500_v55 = vld [vmem:[%s2377_s14 + $0x40] sm:$0xff] }
 0x2a5   : > { %v2419_v16 = vpop.f32.mrb[6].mxu1  ;;  %v734_v26 = vmax.f32 %v726_v6, 0.0 }
 0x2a6   : > { %v2421_v20 = vpop.f32.mrb[7].mxu1  ;;  %v1081_v31 = vadd.f32 %v2419_v16, %v952_v28 }
 0x2a7   : > { %v1076_v33 = vadd.f32 %v2421_v20, %v947_v27 }
 0x2a8   : > { %v2031_v21 = vpop.eup %2030 }
 0x2a9   : > { %v2033_v23 = vpop.eup %2032  ;;  %v1093_v25 = vmul.f32 1.9, %v2031_v21  ;;  %v1066_v21 = vadd.f32 %v1065_v12, %v937_v0 }
 0x2aa   : > { %v1092_v29 = vmul.f32 1.9, %v2033_v23  ;;  %v735_v23 = vmax.f32 %v727_v3, 0.0 }
 0x2ab   : > { %v1098_v34 = vmul.f32 1.442695, %v1093_v25 }
 0x2ac   : > { %v2035_v35 = vpop.eup %2034  ;;  %v1096_v38 = vmul.f32 1.442695, %v1092_v29  ;;  %v1112_v39 = vadd.f32 %v1093_v25, %v1092_v29 }
 0x2ad   : > { %v2037_v40 = vpop.eup %2036  ;;  %2038 = vpow2.f32 %v1098_v34  ;;  %v1095_v43 = vmul.f32 1.9, %v2035_v35 }
 0x2ae   : > { %2040 = vpow2.f32 %v1096_v38  ;;  %v1094_v47 = vmul.f32 1.9, %v2037_v40 }
 0x2af   : > { %v1102_v56 = vmul.f32 1.442695, %v1095_v43 }
 0x2b0   : > { %v1100_v58 = vmul.f32 1.442695, %v1094_v47  ;;  %v1113_v59 = vadd.f32 %v1112_v39, %v1094_v47  ;;  %v471_v47 = vld [vmem:[%s2294_s16 + $0x58] sm:$0xff] }
 0x2b1   : > { %2042 = vpow2.f32 %v1102_v56  ;;  %v502_v56 = vld [vmem:[%s2377_s14 + $0x50] sm:$0xff] }
 0x2b2   : > { %2044 = vpow2.f32 %v1100_v58  ;;  %v2435_v60 = vadd.f32 %v1113_v59, %v1095_v43  ;;  %v469_v43 = vld [vmem:[%s2294_s16 + $0x48] sm:$0xff]  ;;  %1905 = vmatprep.mubr.msk.f32.mxu1 %vm954_vm1, %v502_v56  ;;  %v1125_v58 = vpop.permute.xlu1 %1124  ;;  %v1140_v59 = vpop.permute.xlu0 %1139  ;;  %s396_s16 = scalar_lea.vmem [#allocation4], %s1706_s22 }
 0x2b3   : > { %s1571_s26 = sshll.u32 %s396_s16, 4  ;;  %s2494_s26 = int_to_ptr.vmem [resolvable:$true] %s1571_s26 }
 0x2b4   : > { %s2074_s25 = scalar_lea.vmem %s2494_s26, 32  ;;  %p2081_p13 = scmp.lt.s32.totalorder %s2494_s26, %s2079_s28 }
 0x2b5   : > { %p2075_p8 = scmp.ne.s32.totalorder %s2494_s26, %s2074_s25  ;;  %p2082_p0 = scmp.lt.s32.totalorder %s2080_s29, %s2074_s25 }
 0x2b6   : > { %v1135_v49 = vpop.permute.xlu1 %1134 }
 0x2b7   : > { %v2039_v50 = vpop.eup %2038  ;;  %p2076_p9 = pnand %p2075_p8, %p2231_p10  ;;  %p2083_p1 = por %p2082_p0, %p2081_p13 }
 0x2b8   : > { %v2041_v8 = vpop.eup %2040  ;;  %v1105_v13 = vmul.f32 %v2039_v50, %v733_v2 }
 0x2b9   : > { %v1104_v22 = vmul.f32 %v2041_v8, %v732_v4  ;;  %v1150_v4 = vpop.permute.xlu0 %1149  ;;  %p2077_p12 = pneg %p2076_p9 }
 0x2ba   : > { %v1109_v24 = vadd.f32 %v1105_v13, %v1071_v10  ;;  %v1145_v10 = vpop.permute.xlu1 %1144 }
 0x2bb   : > { %v2043_v25 = vpop.eup %2042  ;;  %v1108_v15 = vadd.f32 %v1104_v22, %v1066_v21  ;;  %p2084_p2 = pnand %p2083_p1, %p2077_p12 }
 0x2bc   : > { %v2045_v29 = vpop.eup %2044  ;;  %v1520_v30 = vmul.f32 %v1109_v24, %v1109_v24  ;;  %v1107_v32 = vmul.f32 %v2043_v25, %v735_v23 }
 0x2bd   : > { %v1519_v34 = vmul.f32 %v1108_v15, %v1108_v15  ;;  %v1542_v35 = vadd.f32 %v1109_v24, %v1108_v15  ;;  %v1106_v11 = vmul.f32 %v2045_v29, %v734_v26  ;;  %v1938_v12 = vpack.c.bf16 %v1109_v24, %v1108_v15  ;;  %v1160_v28 = vpop.permute.xlu0 %1159 }
 0x2be   : > { %v1111_v36 = vadd.f32 %v1107_v32, %v1081_v31 }
 0x2bf   : > { %v1523_v37 = vadd.f32 %v1520_v30, %v1519_v34  ;;  %v1110_v38 = vadd.f32 %v1106_v11, %v1076_v33  ;;  %1939 = vmatprep.subr.bf16.mxu0 %v1938_v12  ;;  %v1155_v30 = vpop.permute.xlu1 %1154 }
 0x2c0   : > { %1941 = vmatpush3.bf16.msra.mxu0 %v1938_v12  ;;  %v1522_v41 = vmul.f32 %v1111_v36, %v1111_v36 }
 0x2c1   : > { %v1521_v39 = vmul.f32 %v1110_v38, %v1110_v38  ;;  %v1543_v40 = vadd.f32 %v1542_v35, %v1110_v38  ;;  %v1942_v16 = vpack.c.bf16 %v1111_v36, %v1110_v38  ;;  %v504_v38 = vld [vmem:[%s2377_s14 + $0x60] sm:$0xff] }
 0x2c3   : > { %v1524_v20 = vadd.f32 %v1523_v37, %v1521_v39  ;;  %v2439_v42 = vadd.f32 %v1543_v40, %v1111_v36  ;;  %1943 = vmatprep.subr.bf16.mxu0 %v1942_v16  ;;  %v501_v36 = vld [vmem:[%s2377_s14 + $0x48] sm:$0xff]  ;;  %v503_v37 = vld [vmem:[%s2377_s14 + $0x58] sm:$0xff]  ;;  %v506_v40 = vld [vmem:[%s2377_s14 + $0x70] sm:$0xff] }
 0x2c4   : > { %1945 = vmatpush3.bf16.msra.mxu0 %v1942_v16  ;;  %v505_v39 = vld [vmem:[%s2377_s14 + $0x68] sm:$0xff]  ;;  %v507_v16 = vld [vmem:[%s2377_s14 + $0x78] sm:$0xff] }
 0x2c5   : > { %v2442_v44 = vadd.f32 %v1524_v20, %v1522_v41  ;;  %v1302_v41 = vpop.permute.xlu1 %1301  ;;  %v1307_v20 = vpop.permute.xlu0 %1306 }
 0x2c7   : > { %1875 = vmatmul.mubr.msk.f32.vlgmr.msra.gmra.mrb[8].mxu0 %vm776_vm0, %v469_v43 }
 0x2c8   : > { %1877 = vmatprep.mubr.msk.f32.mxu0 %vm776_vm0, %v470_v46 }
 0x2c9   : > { %v1312_v43 = vpop.permute.xlu1 %1311  ;;  %v1317_v46 = vpop.permute.xlu0 %1316 }
 0x2cb   : > { %1878 = vmatmul.mubr.msk.f32.gmra.mrb[10].mxu0 %vm776_vm0, %v471_v47 }
 0x2cc   : > { %1880 = vmatprep.mubr.msk.f32.mxu0 %vm776_vm0, %v472_v48 }
 0x2cf   : > { %1881 = vmatmul.mubr.msk.f32.gmra.mrb[12].mxu0 %vm776_vm0, %v473_v51 }
 0x2d0   : > { %1883 = vmatprep.mubr.msk.f32.mxu0 %vm776_vm0, %v474_v52 }
 0x2d3   : > { %1884 = vmatmul.mubr.msk.f32.gmra.mrb[14].mxu0 %vm776_vm0, %v475_v53 }
 0x2d4   : > { %1902 = vmatprep.mubr.msk.f32.mxu0 %vm954_vm1, %v500_v55 }
 0x39a   : > { %v1876_v45 = vpop.f32.mrb[8].mxu0 }
 0x39b   : > { %v1258_v54 = vadd.f32 %v1876_v45, %v1130_v57  ;;  %v1252_v61 = vpop.f32.mrb[9].mxu0 }
 0x39c   : > { %v1253_v62 = vadd.f32 %v1252_v61, %v1125_v58 }
 0x39d   : > { %v1292_v0 = vmax.f32 %v1258_v54, 0.0 }
 0x39e   : > { %v1291_v1 = vmax.f32 %v1253_v62, 0.0  ;;  %v1879_v2 = vpop.f32.mrb[10].mxu0 }
 0x39f   : > { %v1268_v3 = vadd.f32 %v1879_v2, %v1140_v59  ;;  %v1262_v50 = vpop.f32.mrb[11].mxu0 }
 0x3a0   : > { %v1946_v6 = vpack.c.bf16 %v1292_v0, %v1291_v1  ;;  %v1263_v8 = vadd.f32 %v1262_v50, %v1135_v49 }
 0x3a1   : > { %v1294_v13 = vmax.f32 %v1268_v3, 0.0  ;;  %v1115_v3 = vrot.slane %v2435_v60, 4 }
 0x3a2   : > { %v1293_v21 = vmax.f32 %v1263_v8, 0.0  ;;  %v1882_v22 = vpop.f32.mrb[12].mxu0  ;;  %1947 = vmatprep.subr.bf16.mxu0 %v1946_v6  ;;  %1962 = vmatprep.subr.bf16.mxu1 %v1946_v6 }
 0x3a3   : > { %v1278_v23 = vadd.f32 %v1882_v22, %v1150_v4  ;;  %v1272_v24 = vpop.f32.mrb[13].mxu0  ;;  %1949 = vmatpush3.bf16.msra.mxu0 %v1946_v6  ;;  %1966 = vmatpush3.bf16.msra.mxu1 %v1946_v6 }
 0x3a4   : > { %v1950_v25 = vpack.c.bf16 %v1294_v13, %v1293_v21  ;;  %v1273_v26 = vadd.f32 %v1272_v24, %v1145_v10 }
 0x3a5   : > { %v1296_v27 = vmax.f32 %v1278_v23, 0.0  ;;  %v1116_v23 = vadd.f32 %v1115_v3, %v2435_v60 }
 0x3a6   : > { %v1295_v15 = vmax.f32 %v1273_v26, 0.0  ;;  %v1885_v29 = vpop.f32.mrb[14].mxu0  ;;  %1951 = vmatprep.subr.bf16.mxu0 %v1950_v25  ;;  %1963 = vmatprep.subr.bf16.mxu1 %v1950_v25 }
 0x3a7   : > { %v1288_v31 = vadd.f32 %v1885_v29, %v1160_v28  ;;  %v1282_v32 = vpop.f32.mrb[15].mxu0  ;;  %1953 = vmatpush3.bf16.msra.mxu0 %v1950_v25  ;;  %1967 = vmatpush3.bf16.msra.mxu1 %v1950_v25  ;;  %v1117_v28 = vrot.slane %v1116_v23, 2  ;;  %v1327_v29 = vpop.permute.xlu0 %1326 }
 0x3a8   : > { %v1954_v33 = vpack.c.bf16 %v1296_v27, %v1295_v15  ;;  %v1283_v34 = vadd.f32 %v1282_v32, %v1155_v30 }
 0x3a9   : > { %v1298_v35 = vmax.f32 %v1288_v31, 0.0  ;;  %v1322_v31 = vpop.permute.xlu1 %1321  ;;  %v1118_v32 = vadd.f32 %v1117_v28, %v1116_v23 }
 0x3aa   : > { %v1297_v11 = vmax.f32 %v1283_v34, 0.0  ;;  %1955 = vmatprep.subr.bf16.mxu0 %v1954_v33  ;;  %1964 = vmatprep.subr.bf16.mxu1 %v1954_v33 }
 0x3ab   : > { %1957 = vmatpush3.bf16.msra.mxu0 %v1954_v33  ;;  %1968 = vmatpush3.bf16.msra.mxu1 %v1954_v33 }
 0x3ac   : > { %v1958_v12 = vpack.c.bf16 %v1298_v35, %v1297_v11 }
 0x3ae   : > { %1959 = vmatprep.subr.bf16.mxu0 %v1958_v12  ;;  %1965 = vmatprep.subr.bf16.mxu1 %v1958_v12 }
 0x3af   : > { %1961 = vmatpush3.bf16.msra.mxu0 %v1958_v12  ;;  %1969 = vmatpush3.bf16.msra.mxu1 %v1958_v12  ;;  %v1337_v12 = vpop.permute.xlu0 %1336 }
 0x3b2   : > { %1903 = vmatmul.mubr.msk.f32.vlgmr.msra.gmra.mrb[16].mxu0 %vm954_vm1, %v501_v36  ;;  %1906 = vmatmul.mubr.msk.f32.vlgmr.msra.gmra.mrb[8].mxu1 %vm954_vm1, %v503_v37 }
 0x3b3   : > { %1908 = vmatprep.mubr.msk.f32.mxu1 %vm954_vm1, %v504_v38  ;;  %v1119_v38 = vrot.slane %v1118_v32, 1 }
 0x3b6   : > { %1909 = vmatmul.mubr.msk.f32.gmra.mrb[10].mxu1 %vm954_vm1, %v505_v39 }
 0x3b7   : > { %1911 = vmatprep.mubr.msk.f32.mxu1 %vm954_vm1, %v506_v40 }
 0x3ba   : > { %1912 = vmatmul.mubr.msk.f32.gmra.mrb[12].mxu1 %vm954_vm1, %v507_v16 }
 0x485   : > { %v1904_v47 = vpop.f32.mrb[16].mxu0  ;;  %v1907_v48 = vpop.f32.mrb[8].mxu1 }
 0x486   : > { %v1435_v51 = vadd.f32 %v1904_v47, %v1307_v20  ;;  %v1445_v52 = vadd.f32 %v1907_v48, %v1317_v46  ;;  %v1429_v53 = vpop.f32.mrb[17].mxu0  ;;  %v1439_v55 = vpop.f32.mrb[9].mxu1 }
 0x487   : > { %v1430_v56 = vadd.f32 %v1429_v53, %v1302_v41  ;;  %v1440_v57 = vadd.f32 %v1439_v55, %v1312_v43  ;;  %v1332_v20 = vpop.permute.xlu1 %1331  ;;  %v1545_v43 = vrot.slane %v2439_v42, 4  ;;  %v1526_v53 = vrot.slane %v2442_v44, 4 }
 0x488   : > { %v1469_v58 = vmul.f32 0.5263158, %v1435_v51  ;;  %v1471_v59 = vmul.f32 0.5263158, %v1445_v52 }
 0x489   : > { %v1468_v45 = vmul.f32 0.5263158, %v1430_v56  ;;  %v1470_v49 = vmul.f32 0.5263158, %v1440_v57  ;;  %v1910_v54 = vpop.f32.mrb[10].mxu1  ;;  %v1120_v56 = vadd.f32 %v1119_v38, %v1118_v32  ;;  %v1527_v5 = vadd.f32 %v1526_v53, %v2442_v44 }
 0x48a   : > { %2046 = vtanh.f32 %v1469_v58  ;;  %v1449_v61 = vpop.f32.mrb[11].mxu1  ;;  %v1455_v60 = vadd.f32 %v1910_v54, %v1327_v29  ;;  %v1546_v58 = vadd.f32 %v1545_v43, %v2439_v42 }
 0x48b   : > { %2048 = vtanh.f32 %v1471_v59  ;;  %v1450_v47 = vadd.f32 %v1449_v61, %v1322_v31 }
 0x48c   : > { %2050 = vtanh.f32 %v1468_v45 }
 0x48d   : > { %2052 = vtanh.f32 %v1470_v49  ;;  %v1913_v62 = vpop.f32.mrb[12].mxu1 }
 0x48e   : > { %v1459_v0 = vpop.f32.mrb[13].mxu1  ;;  %v1465_v40 = vadd.f32 %v1913_v62, %v1337_v12  ;;  %v1547_v62 = vrot.slane %v1546_v58, 2 }
 0x48f   : > { %v1460_v63 = vadd.f32 %v1459_v0, %v1332_v20 }
 0x494   : > { %v2047_v1 = vpop.eup %2046 }
 0x495   : > { %v2049_v2 = vpop.eup %2048  ;;  %v1477_v50 = vmul.f32 1.9, %v2047_v1  ;;  %v1528_v1 = vrot.slane %v1527_v5, 2 }
 0x496   : > { %v2051_v4 = vpop.eup %2050  ;;  %v1479_v6 = vmul.f32 1.9, %v2049_v2 }
 0x497   : > { %v2053_v8 = vpop.eup %2052  ;;  %v1482_v10 = vmul.f32 1.442695, %v1477_v50  ;;  %v1476_v13 = vmul.f32 1.9, %v2051_v4  ;;  %v1529_v42 = vadd.f32 %v1528_v1, %v1527_v5 }
 0x498   : > { %v1486_v21 = vmul.f32 1.442695, %v1479_v6  ;;  %v1478_v22 = vmul.f32 1.9, %v2053_v8 }
 0x499   : > { %2054 = vpow2.f32 %v1482_v10  ;;  %v1480_v24 = vmul.f32 1.442695, %v1476_v13  ;;  %v1496_v25 = vadd.f32 %v1477_v50, %v1476_v13 }
 0x49a   : > { %2056 = vpow2.f32 %v1486_v21  ;;  %v1484_v26 = vmul.f32 1.442695, %v1478_v22 }
 0x49b   : > { %2058 = vpow2.f32 %v1480_v24  ;;  %v1497_v27 = vadd.f32 %v1496_v25, %v1478_v22  ;;  %v1530_v24 = vrot.slane %v1529_v42, 1 }
 0x49c   : > { %2060 = vpow2.f32 %v1484_v26 }
 0x49d   : > { %v1498_v15 = vadd.f32 %v1497_v27, %v1479_v6  ;;  %v1548_v6 = vadd.f32 %v1547_v62, %v1546_v58 }
 0x49f   : > { %v1499_v30 = vrot.slane %v1498_v15, 4  ;;  %v1549_v21 = vrot.slane %v1548_v6, 1 }
 0x4a1   : > { %v1500_v33 = vadd.f32 %v1499_v30, %v1498_v15  ;;  %v1550_v27 = vadd.f32 %v1549_v21, %v1548_v6  ;;  %v1531_v15 = vadd.f32 %v1530_v24, %v1529_v42 }
 0x4a3   : > { %v2055_v34 = vpop.eup %2054  ;;  %v1501_v35 = vrot.slane %v1500_v33, 2 }
 0x4a4   : > { %v2057_v11 = vpop.eup %2056  ;;  %v1489_v36 = vmul.f32 %v2055_v34, %v729_v7 }
 0x4a5   : > { %v2059_v37 = vpop.eup %2058  ;;  %v1502_v39 = vadd.f32 %v1501_v35, %v1500_v33  ;;  %v1491_v16 = vmul.f32 %v2057_v11, %v731_v19 }
 0x4a6   : > { %v2061_v41 = vpop.eup %2060  ;;  %v1493_v46 = vadd.f32 %v1489_v36, %v1455_v60  ;;  %v1488_v48 = vmul.f32 %v2059_v37, %v728_v9 }
 0x4a7   : > { %v1503_v51 = vrot.slane %v1502_v39, 1  ;;  %v1495_v52 = vadd.f32 %v1491_v16, %v1465_v40  ;;  %v1490_v7 = vmul.f32 %v2061_v41, %v730_v18 }
 0x4a8   : > { %v1507_v55 = vmul.f32 %v1493_v46, %v1493_v46  ;;  %v1492_v17 = vadd.f32 %v1488_v48, %v1450_v47 }
 0x4a9   : > { %v1494_v19 = vadd.f32 %v1490_v7, %v1460_v63  ;;  %v1504_v57 = vadd.f32 %v1503_v51, %v1502_v39  ;;  %v1509_v14 = vmul.f32 %v1495_v52, %v1495_v52 }
 0x4aa   : > { %v1506_v59 = vmul.f32 %v1492_v17, %v1492_v17  ;;  %v1533_v45 = vadd.f32 %v1493_v46, %v1492_v17 }
 0x4ab   : > { %v1505_v49 = vadd.f32 %v1504_v57, %v1120_v56  ;;  %v1508_v54 = vmul.f32 %v1494_v19, %v1494_v19 }
 0x4ac   : > { %v1510_v9 = vadd.f32 %v1507_v55, %v1506_v59  ;;  %v1534_v61 = vadd.f32 %v1533_v45, %v1494_v19 }
 0x4ae   : > { %v1511_v18 = vadd.f32 %v1510_v9, %v1508_v54  ;;  %v1535_v0 = vadd.f32 %v1534_v61, %v1495_v52 }
 0x4b0   : > { %v1512_v2 = vadd.f32 %v1511_v18, %v1509_v14  ;;  %v1536_v3 = vrot.slane %v1535_v0, 4 }
 0x4b2   : > { %v1513_v50 = vrot.slane %v1512_v2, 4  ;;  %v1537_v4 = vadd.f32 %v1536_v3, %v1535_v0 }
 0x4b4   : > { %v1514_v8 = vadd.f32 %v1513_v50, %v1512_v2  ;;  %v1538_v10 = vrot.slane %v1537_v4, 2 }
 0x4b6   : > { %v1515_v13 = vrot.slane %v1514_v8, 2  ;;  %v1539_v44 = vadd.f32 %v1538_v10, %v1537_v4 }
 0x4b8   : > { %v1516_v22 = vadd.f32 %v1515_v13, %v1514_v8  ;;  %v1540_v23 = vrot.slane %v1539_v44, 1 }
 0x4ba   : > { %v1517_v25 = vrot.slane %v1516_v22, 1  ;;  %v1541_v26 = vadd.f32 %v1540_v23, %v1539_v44 }
 0x4bc   : > { %v1518_v28 = vadd.f32 %v1517_v25, %v1516_v22  ;;  %v1551_v29 = vadd.f32 %v1550_v27, %v1541_v26 }
 0x4be   : > { %v1532_v30 = vadd.f32 %v1531_v15, %v1518_v28 }
 0x4c0   : > { %v1552_v31 = vmul.f32 0.5, %v1532_v30 }
 0x4c2   : > { %v1553_v32 = vsub.f32 %v1552_v31, %v1505_v49 }
 0x4c4   : > { %v1555_v33 = vsel %vm1554_vm2, %v1553_v32, %v1551_v29 }
 0x4c5   : > { %1556 = vst [vmem:[%s396_s16] sm:$0x3] %v1555_v33 }
 0x4c6   : > { %2087 = shalt.err (!%p2084_p2)
}
 0x4c7   : > { %s2088_s30 = scalar_lea.hbm %s2492_s23, 32  ;;  %s2092_s22 = scalar_lea.hbm %s2542_s8, 192 }
 0x4c8   : > { %p2089_p3 = scmp.ne.s32.totalorder %s2492_s23, %s2088_s30  ;;  %p2093_p6 = scmp.lt.u32.totalorder %s2492_s23, %s2542_s8 }
 0x4c9   : > { %p2094_p7 = scmp.lt.u32.totalorder %s2092_s22, %s2088_s30  ;;  %p2096_p9 = scmp.lt.u32.totalorder %s2088_s30, %s2492_s23 }
 0x4ca   : > { %p2090_p4 = pnand %p2089_p3, %p2231_p10 }
 0x4cb   : > { %p2095_p8 = por %p2094_p7, %p2093_p6 }
 0x4cc   : > { %p2091_p5 = pneg %p2090_p4 }
 0x4cd   : > { %p2097_p12 = por %p2096_p9, %p2095_p8 }
 0x4cf   : > { %p2098_p13 = pnand %p2097_p12, %p2091_p5 }
 0x4d1   : > { %2101 = shalt.err (!%p2098_p13)
}
 0x4d2   : > { %1970 = dma.vmem_to_hbm [thread:$0]  (%p2231_p10), %s2494_s26, 32, %s2492_s23, %s1558_s24  }
 0x4d3 PF: > { %p1976_p0 = scmp.ge.s32.totalorder %s2138_s12, 2  ;;  %s1583_s17 = sand.u32 1, %s2126_s10  }
 0x4d4   : > { %s1584_s21 = scalar_lea.sflag [#allocation5], %s1583_s17 }
 0x4d5   : > { %p1973_p1 = pnand %p1976_p0, %p2235_p11 }
 0x4d7   : > { %2121 = dma.done.wait (!%p1973_p1), %s1584_s21, 32  }
 0x4d8   : > { %2123 = vsyncadd (!%p1973_p1), %s1584_s21, 4294967264  ;;  %p24_p2 = scmp.ge.s32.totalorder %s2218_s15, 8   ;;  %s2545_s10 = smov %s2130_s11 }
 0x4d9   : > { %s2546_s11 = smov %s2134_s0  ;;  %s2547_s0 = smov %s2229_s18 }
 0x4da   : > { %s2548_s12 = smov %s2218_s15  ;;  %26 = sbr.rel (!%p24_p2) target bundleno = 18 (0x12), region = 101 }
 0x4e1   :  { %1589 = vsyncpa [#allocation5], 1 }
 0x4e2   :  { %1591 = vsyncpa [#allocation5 + $0x1], 1 }

</bundles_post_ra>
